<compile_context>
chip_gen: v7x
topology: tpu7x:2x2x1
jax: 0.10.0
libtpu: 0.0.40
codegen_flags: <defaults>
</compile_context>

<pallas_src>
import functools

import jax
import jax.numpy as jnp
from jax.experimental import pallas as pl
from jax.experimental.pallas import tpu as pltpu

LN_EPS = 1e-5  # torch.nn.LayerNorm default


def _grouped_ln_kernel(x_ref, g_ref, b_ref, o_ref, *, groups, group_size):
    """Row-wise grouped LayerNorm over contiguous groups of `group_size` lanes.

    x_ref / o_ref: (TM, C) with C = groups * group_size (lane-dense blocks)
    g_ref / b_ref: (1, C) affine params, already tiled per group.
    """
    x = x_ref[...].astype(jnp.float32)                       # (TM, C)
    C = groups * group_size

    # Block-diagonal 0/1 selection matrices, built in-registers (no HBM traffic,
    # no integer division):
    #   M[i, g]  = 1  iff lane i belongs to group g          (C, G)
    #   MT[g, i] = 1  iff lane i belongs to group g          (G, C)
    lane = jax.lax.broadcasted_iota(jnp.int32, (C, groups), 0)
    glo = jax.lax.broadcasted_iota(jnp.int32, (C, groups), 1) * group_size
    M = jnp.where((lane >= glo) & (lane < glo + group_size), 1.0, 0.0).astype(jnp.float32)

    lane_t = jax.lax.broadcasted_iota(jnp.int32, (groups, C), 1)
    glo_t = jax.lax.broadcasted_iota(jnp.int32, (groups, C), 0) * group_size
    MT = jnp.where((lane_t >= glo_t) & (lane_t < glo_t + group_size), 1.0, 0.0).astype(jnp.float32)

    hp = jax.lax.Precision.HIGHEST           # full-f32-accuracy group sums on the MXU
    inv_n = jnp.float32(1.0 / group_size)

    # group sums -> broadcast group statistic back to every lane of its group
    gsum = jnp.dot(x, M, precision=hp, preferred_element_type=jnp.float32)               # (TM, G)
    mean = jnp.dot(gsum, MT, precision=hp, preferred_element_type=jnp.float32) * inv_n   # (TM, C)
    xc = x - mean
    vsum = jnp.dot(xc * xc, M, precision=hp, preferred_element_type=jnp.float32)         # (TM, G)
    var = jnp.dot(vsum, MT, precision=hp, preferred_element_type=jnp.float32) * inv_n    # (TM, C)

    y = xc * jax.lax.rsqrt(var + LN_EPS)
    y = y * g_ref[...].astype(jnp.float32) + b_ref[...].astype(jnp.float32)
    o_ref[...] = y.astype(o_ref.dtype)


def edge_patch_expand(x, H, W, gamma, beta, dim_scale=4):
    """x: (B, H*W, C) -> (B, C // dim_scale**2, H*dim_scale, W*dim_scale)."""
    B, L, C = x.shape
    assert L == H * W, "input feature has wrong size"
    p = dim_scale
    G = p * p
    c = C // G
    assert c * G == C

    # (B, H*W, C) -> (N, C) is a free (contiguous) reshape, no rearrange copy.
    N = B * H * W
    x2 = x.reshape(N, C)

    # Row-tile sizing: ~2 MiB input block.  With double-buffered in+out plus
    # f32 temporaries this stays well under 32 MiB scoped VMEM on every gen
    # (including v7x's 64 MiB physical VMEM) while amortizing per-step overhead.
    itemsize = jnp.dtype(x.dtype).itemsize
    target_rows = max(8, (2 * 1024 * 1024) // (C * itemsize))
    if N <= target_rows:
        # Small problem: split into two full blocks when cleanly possible so a
        # dual-TensorCore chip (v7x) still gets >=2 "parallel" grid steps.
        tm = N // 2 if (N >= 16 and N % 16 == 0) else N
    else:
        tm = (target_rows // 8) * 8          # sublane-aligned large tile
    grid_m = -(-N // tm)                     # cdiv
    n_pad = grid_m * tm
    if n_pad != N:                           # rare remainder case: pad rows
        x2 = jnp.pad(x2, ((0, n_pad - N), (0, 0)))

    # Tile the (c,)-sized affine params across the 16 groups -> lane-dense (1, C).
    g2 = jnp.tile(gamma, G).reshape(1, C)
    b2 = jnp.tile(beta, G).reshape(1, C)

    kernel = functools.partial(_grouped_ln_kernel, groups=G, group_size=c)
    y2 = pl.pallas_call(
        kernel,
        out_shape=jax.ShapeDtypeStruct((n_pad, C), x.dtype),
        grid_spec=pltpu.PrefetchScalarGridSpec(
            num_scalar_prefetch=0,
            grid=(grid_m,),
            in_specs=[
                pl.BlockSpec((tm, C), lambda i: (i, 0)),
                pl.BlockSpec((1, C), lambda i: (0, 0)),
                pl.BlockSpec((1, C), lambda i: (0, 0)),
            ],
            out_specs=pl.BlockSpec((tm, C), lambda i: (i, 0)),
        ),
        compiler_params=pltpu.CompilerParams(
            dimension_semantics=("parallel",),
            vmem_limit_bytes=32 * 1024 * 1024,
        ),
    )(x2, g2, b2)

    if n_pad != N:
        y2 = y2[:N]

    # Single fused layout pass (spatial rearrange + NCHW permute):
    #   (B*H*W, C) -> (B, H, W, p, p, c) -> transpose -> (B, c, H*p, W*p)
    y = y2.reshape(B, H, W, p, p, c)
    y = jnp.transpose(y, (0, 5, 1, 3, 2, 4)).reshape(B, c, H * p, W * p)
    return y


def _reference(x, H, W, gamma, beta, dim_scale=4):
    B, L, C = x.shape
    p = dim_scale
    c = C // (p * p)
    xr = x.reshape(B, H, W, p, p, c)
    xr = jnp.transpose(xr, (0, 1, 3, 2, 4, 5)).reshape(B, H * p, W * p, c)
    xf = xr.astype(jnp.float32)
    mean = jnp.mean(xf, axis=-1, keepdims=True)
    var = jnp.mean((xf - mean) ** 2, axis=-1, keepdims=True)
    y = (xf - mean) * jax.lax.rsqrt(var + LN_EPS) * gamma + beta
    return jnp.transpose(y.astype(x.dtype), (0, 3, 1, 2))


if __name__ == "__main__":
    key = jax.random.PRNGKey(0)
    k_x, k_g, k_b = jax.random.split(key, 3)

    B, H, W, dim = 2, 8, 8, 64          # dim must be divisible by 16
    c_out = dim // 16

    x = jax.random.normal(k_x, (B, H * W, dim), dtype=jnp.float32)
    # deterministic synthetic LayerNorm params (non-trivial to exercise affine)
    gamma = 1.0 + 0.1 * jax.random.normal(k_g, (c_out,), dtype=jnp.float32)
    beta = 0.1 * jax.random.normal(k_b, (c_out,), dtype=jnp.float32)

    fwd = jax.jit(lambda xx, gg, bb: edge_patch_expand(xx, H, W, gg, bb, dim_scale=4))
    out = jax.block_until_ready(fwd(x, gamma, beta))

    ref = _reference(x, H, W, gamma, beta, dim_scale=4)
    assert out.shape == (B, c_out, H * 4, W * 4), out.shape
    assert jnp.allclose(out, ref, atol=1e-4, rtol=1e-4), float(jnp.max(jnp.abs(out - ref)))

    print("KERNEL_OK")
</pallas_src>

<mosaic_0001>
module attributes {stable_mosaic.version = 11 : i64} {
  func.func @_grouped_ln_kernel(%arg0: i32, %arg1: memref<64x64xf32, #tpu.memory_space<vmem>>, %arg2: memref<1x64xf32, #tpu.memory_space<vmem>>, %arg3: memref<1x64xf32, #tpu.memory_space<vmem>>, %arg4: memref<64x64xf32, #tpu.memory_space<vmem>>) attributes {dimension_semantics = [#tpu.dimension_semantics<parallel>], iteration_bounds = array<i64: 2>, scalar_prefetch = 0 : i64, scratch_operands = 0 : i64, tpu.core_type = #tpu.core_type<tc>, window_params = [{transform_indices = @transform_0, window_bounds = array<i64: 64, 64>}, {pipeline_mode = #tpu.pipeline_mode<synchronous>, transform_indices = @transform_1, window_bounds = array<i64: 1, 64>}, {pipeline_mode = #tpu.pipeline_mode<synchronous>, transform_indices = @transform_2, window_bounds = array<i64: 1, 64>}, {transform_indices = @transform_3, window_bounds = array<i64: 64, 64>}]} {
    %c0 = arith.constant 0 : index
    %c0_0 = arith.constant 0 : index
    %0 = vector.load %arg1[%c0, %c0_0] : memref<64x64xf32, #tpu.memory_space<vmem>>, vector<64x64xf32>
    %1 = tpu.iota {dimensions = array<i32: 0>} : vector<64x16xi32>
    %2 = tpu.iota {dimensions = array<i32: 1>} : vector<64x16xi32>
    %c4_i32 = arith.constant 4 : i32
    %3 = vector.broadcast %c4_i32 : i32 to vector<64x16xi32>
    %4 = arith.muli %2, %3 : vector<64x16xi32>
    %5 = arith.cmpi sge, %1, %4 : vector<64x16xi32>
    %c4_i32_1 = arith.constant 4 : i32
    %6 = vector.broadcast %c4_i32_1 : i32 to vector<64x16xi32>
    %7 = arith.addi %4, %6 : vector<64x16xi32>
    %8 = arith.cmpi slt, %1, %7 : vector<64x16xi32>
    %9 = arith.andi %5, %8 : vector<64x16xi1>
    %cst = arith.constant 1.000000e+00 : f32
    %cst_2 = arith.constant 0.000000e+00 : f32
    %10 = vector.broadcast %cst : f32 to vector<64x16xf32>
    %11 = vector.broadcast %cst_2 : f32 to vector<64x16xf32>
    %12 = arith.select %9, %10, %11 : vector<64x16xi1>, vector<64x16xf32>
    %13 = tpu.iota {dimensions = array<i32: 1>} : vector<16x64xi32>
    %14 = tpu.iota {dimensions = array<i32: 0>} : vector<16x64xi32>
    %c4_i32_3 = arith.constant 4 : i32
    %15 = vector.broadcast %c4_i32_3 : i32 to vector<16x64xi32>
    %16 = arith.muli %14, %15 : vector<16x64xi32>
    %17 = arith.cmpi sge, %13, %16 : vector<16x64xi32>
    %c4_i32_4 = arith.constant 4 : i32
    %18 = vector.broadcast %c4_i32_4 : i32 to vector<16x64xi32>
    %19 = arith.addi %16, %18 : vector<16x64xi32>
    %20 = arith.cmpi slt, %13, %19 : vector<16x64xi32>
    %21 = arith.andi %17, %20 : vector<16x64xi1>
    %cst_5 = arith.constant 1.000000e+00 : f32
    %cst_6 = arith.constant 0.000000e+00 : f32
    %22 = vector.broadcast %cst_5 : f32 to vector<16x64xf32>
    %23 = vector.broadcast %cst_6 : f32 to vector<16x64xf32>
    %24 = arith.select %21, %22, %23 : vector<16x64xi1>, vector<16x64xf32>
    %cst_7 = arith.constant dense<0.000000e+00> : vector<64x16xf32>
    %25 = tpu.matmul %0, %12, %cst_7 {dimension_numbers = #tpu.dot_dimension_numbers<[1], [0], [0], [1], [0, 0, 1, 1], [], []>, precision = #tpu.contract_precision<fp32>} : vector<64x64xf32>, vector<64x16xf32>, vector<64x16xf32> -> vector<64x16xf32>
    %cst_8 = arith.constant dense<0.000000e+00> : vector<64x64xf32>
    %26 = tpu.matmul %25, %24, %cst_8 {dimension_numbers = #tpu.dot_dimension_numbers<[1], [0], [0], [1], [0, 0, 1, 1], [], []>, precision = #tpu.contract_precision<fp32>} : vector<64x16xf32>, vector<16x64xf32>, vector<64x64xf32> -> vector<64x64xf32>
    %cst_9 = arith.constant 2.500000e-01 : f32
    %27 = vector.broadcast %cst_9 : f32 to vector<64x64xf32>
    %28 = arith.mulf %26, %27 : vector<64x64xf32>
    %29 = arith.subf %0, %28 : vector<64x64xf32>
    %30 = arith.mulf %29, %29 : vector<64x64xf32>
    %cst_10 = arith.constant dense<0.000000e+00> : vector<64x16xf32>
    %31 = tpu.matmul %30, %12, %cst_10 {dimension_numbers = #tpu.dot_dimension_numbers<[1], [0], [0], [1], [0, 0, 1, 1], [], []>, precision = #tpu.contract_precision<fp32>} : vector<64x64xf32>, vector<64x16xf32>, vector<64x16xf32> -> vector<64x16xf32>
    %cst_11 = arith.constant dense<0.000000e+00> : vector<64x64xf32>
    %32 = tpu.matmul %31, %24, %cst_11 {dimension_numbers = #tpu.dot_dimension_numbers<[1], [0], [0], [1], [0, 0, 1, 1], [], []>, precision = #tpu.contract_precision<fp32>} : vector<64x16xf32>, vector<16x64xf32>, vector<64x64xf32> -> vector<64x64xf32>
    %cst_12 = arith.constant 2.500000e-01 : f32
    %33 = vector.broadcast %cst_12 : f32 to vector<64x64xf32>
    %34 = arith.mulf %32, %33 : vector<64x64xf32>
    %cst_13 = arith.constant 9.99999974E-6 : f32
    %35 = vector.broadcast %cst_13 : f32 to vector<64x64xf32>
    %36 = arith.addf %34, %35 : vector<64x64xf32>
    %37 = math.rsqrt %36 : vector<64x64xf32>
    %38 = arith.mulf %29, %37 : vector<64x64xf32>
    %c0_14 = arith.constant 0 : index
    %c0_15 = arith.constant 0 : index
    %39 = vector.load %arg2[%c0_14, %c0_15] : memref<1x64xf32, #tpu.memory_space<vmem>>, vector<1x64xf32>
    %40 = vector.broadcast %39 : vector<1x64xf32> to vector<64x64xf32>
    %41 = arith.mulf %38, %40 : vector<64x64xf32>
    %c0_16 = arith.constant 0 : index
    %c0_17 = arith.constant 0 : index
    %42 = vector.load %arg3[%c0_16, %c0_17] : memref<1x64xf32, #tpu.memory_space<vmem>>, vector<1x64xf32>
    %43 = vector.broadcast %42 : vector<1x64xf32> to vector<64x64xf32>
    %44 = arith.addf %41, %43 : vector<64x64xf32>
    %c0_18 = arith.constant 0 : index
    %c0_19 = arith.constant 0 : index
    %45 = vector.load %arg4[%c0_18, %c0_19] : memref<64x64xf32, #tpu.memory_space<vmem>>, vector<64x64xf32>
    tpu.vector_store %arg4[%c0_18, %c0_19], %44 {strides = array<i32>} : memref<64x64xf32, #tpu.memory_space<vmem>>, vector<64x64xf32>,
    return
  }
  func.func @transform_0(%arg0: i32) -> (i32, i32) {
    %c0_i32 = arith.constant 0 : i32
    %c0_i32_0 = arith.constant 0 : i32
    return %arg0, %c0_i32 : i32, i32
  }
  func.func @transform_1(%arg0: i32) -> (i32, i32) {
    %c0_i32 = arith.constant 0 : i32
    %c0_i32_0 = arith.constant 0 : i32
    %c0_i32_1 = arith.constant 0 : i32
    return %c0_i32, %c0_i32_0 : i32, i32
  }
  func.func @transform_2(%arg0: i32) -> (i32, i32) {
    %c0_i32 = arith.constant 0 : i32
    %c0_i32_0 = arith.constant 0 : i32
    %c0_i32_1 = arith.constant 0 : i32
    return %c0_i32, %c0_i32_0 : i32, i32
  }
  func.func @transform_3(%arg0: i32) -> (i32, i32) {
    %c0_i32 = arith.constant 0 : i32
    %c0_i32_0 = arith.constant 0 : i32
    return %arg0, %c0_i32 : i32, i32
  }
}

</mosaic_0001>

<bundles_post_ra>
// kernel: tile.14
= control target key start
LH: loop header
LB: loop body
LE: loop exit
PB: predicated region body
PF: predicated region fallthrough
CT: control target
= control target key end

     0   :  { %s131_s10 = smov 60   ;;  %s132_s11 = smov 52   ;;  %vm3_vm0 = vcmask 31744   ;;  %vm9_vm1 = vcmask 523744   ;;  %vm15_vm2 = vcmask 490944   ;;  %vm21_vm3 = vcmask 458144   ;;  %s207_s0 = inlined_call_operand.vmem [shape: f32[16,4], index: 0, kind: input, shape index: {}]   ;;  %s208_s1 = inlined_call_operand.vmem [shape: f32[1,64], index: 1, kind: output, shape index: {}]  }
   0x1   :  { %v101_v0 = vld [vmem:[%s207_s0 + $0xf] sm:$0x1]   ;;  %v103_v1 = vld [vmem:[%s207_s0 + $0xd] sm:$0x1]   ;;  %v102_v2 = vld [vmem:[%s207_s0 + $0xe] sm:$0x1]  }
   0x2   :  { %7 = vrot.lane.b32.xlu0 %v101_v0, %s131_s10  ;;  %19 = vrot.lane.b32.xlu1 %v103_v1, %s132_s11  ;;  %v104_v3 = vld [vmem:[%s207_s0 + $0xc] sm:$0x1]   ;;  %s133_s16 = smov 56   ;;  %s134_s17 = smov 48   ;;  %v105_v4 = vld [vmem:[%s207_s0 + $0xb] sm:$0x1]  }
   0x3   :  { %v106_v5 = vld [vmem:[%s207_s0 + $0xa] sm:$0x1]   ;;  %v2_v6 = vld [vmem:[%s207_s0] sm:$0x1]   ;;  %s135_s24 = smov 44   ;;  %s136_s25 = smov 40  }
   0x4   :  { %4 = vst.msk [vmem:[#allocation0] sm:$0x1] %vm3_vm0, %v2_v6   ;;  %v107_v7 = vld [vmem:[%s207_s0 + $0x9] sm:$0x1]   ;;  %v108_v8 = vld [vmem:[%s207_s0 + $0x8] sm:$0x1]  }
   0x5   :  { %s137_s30 = smov 36   ;;  %s138_s2 = smov 32   ;;  %v109_v9 = vld [vmem:[%s207_s0 + $0x7] sm:$0x1]   ;;  %v110_v10 = vld [vmem:[%s207_s0 + $0x6] sm:$0x1]  }
   0x6   :  { %13 = vrot.lane.b32.xlu0 %v102_v2, %s133_s16  ;;  %25 = vrot.lane.b32.xlu1 %v104_v3, %s134_s17  ;;  %s139_s7 = smov 28   ;;  %s140_s8 = smov 24   ;;  %v111_v11 = vld [vmem:[%s207_s0 + $0x5] sm:$0x1]   ;;  %v112_v12 = vld [vmem:[%s207_s0 + $0x4] sm:$0x1]  }
   0x7   :  { %s141_s13 = smov 20   ;;  %s142_s14 = smov 16   ;;  %v113_v13 = vld [vmem:[%s207_s0 + $0x3] sm:$0x1]   ;;  %v114_v14 = vld [vmem:[%s207_s0 + $0x2] sm:$0x1]  }
   0x8   :  { %s143_s19 = smov 12   ;;  %s144_s20 = smov 8   ;;  %v115_v15 = vld [vmem:[%s207_s0 + $0x1] sm:$0x1]   ;;  %vm27_vm4 = vcmask 425344   ;;  %vm33_vm5 = vcmask 392544  }
   0x9   :  { %s145_s0 = smov 4   ;;  %vm39_vm6 = vcmask 359744   ;;  %vm45_vm7 = vcmask 326944   ;;  %vm51_vm8 = vcmask 294144   ;;  %vm57_vm9 = vcmask 261344  }
   0xa   :  { %31 = vrot.lane.b32.xlu0 %v105_v4, %s135_s24  ;;  %37 = vrot.lane.b32.xlu1 %v106_v5, %s136_s25  ;;  %vm63_vm10 = vcmask 228544   ;;  %vm69_vm11 = vcmask 195744   ;;  %vm75_vm12 = vcmask 162944   ;;  %vm81_vm13 = vcmask 130144  }
   0xb   :  { %vm87_vm14 = vcmask 97344   ;;  %vm93_vm15 = vcmask 64544  }
   0xe   :  { %43 = vrot.lane.b32.xlu0 %v107_v7, %s137_s30  ;;  %49 = vrot.lane.b32.xlu1 %v108_v8, %s138_s2 }
  0x12   :  { %55 = vrot.lane.b32.xlu0 %v109_v9, %s139_s7  ;;  %61 = vrot.lane.b32.xlu1 %v110_v10, %s140_s8 }
  0x16   :  { %67 = vrot.lane.b32.xlu0 %v111_v11, %s141_s13  ;;  %73 = vrot.lane.b32.xlu1 %v112_v12, %s142_s14 }
  0x1a   :  { %79 = vrot.lane.b32.xlu0 %v113_v13, %s143_s19  ;;  %85 = vrot.lane.b32.xlu1 %v114_v14, %s144_s20 }
  0x1e   :  { %91 = vrot.lane.b32.xlu0 %v115_v15, %s145_s0 }
  0x74   :  { %v8_v16 = vpop.permute.xlu0 %7   ;;  %v20_v17 = vpop.permute.xlu1 %19  }
  0x75   :  { %10 = vst.msk [vmem:[#allocation0] sm:$0x1] %vm9_vm1, %v8_v16  }
  0x78   :  { %v14_v18 = vpop.permute.xlu0 %13   ;;  %v26_v19 = vpop.permute.xlu1 %25  }
  0x79   :  { %16 = vst.msk [vmem:[#allocation0] sm:$0x1] %vm15_vm2, %v14_v18  }
  0x7a   :  { %22 = vst.msk [vmem:[#allocation0] sm:$0x1] %vm21_vm3, %v20_v17  }
  0x7b   :  { %28 = vst.msk [vmem:[#allocation0] sm:$0x1] %vm27_vm4, %v26_v19  }
  0x7c   :  { %v32_v20 = vpop.permute.xlu0 %31   ;;  %v38_v21 = vpop.permute.xlu1 %37  }
  0x7d   :  { %34 = vst.msk [vmem:[#allocation0] sm:$0x1] %vm33_vm5, %v32_v20  }
  0x7e   :  { %40 = vst.msk [vmem:[#allocation0] sm:$0x1] %vm39_vm6, %v38_v21  }
  0x80   :  { %v44_v22 = vpop.permute.xlu0 %43   ;;  %v50_v23 = vpop.permute.xlu1 %49  }
  0x81   :  { %46 = vst.msk [vmem:[#allocation0] sm:$0x1] %vm45_vm7, %v44_v22  }
  0x82   :  { %52 = vst.msk [vmem:[#allocation0] sm:$0x1] %vm51_vm8, %v50_v23  }
  0x84   :  { %v56_v24 = vpop.permute.xlu0 %55   ;;  %v62_v25 = vpop.permute.xlu1 %61  }
  0x85   :  { %58 = vst.msk [vmem:[#allocation0] sm:$0x1] %vm57_vm9, %v56_v24  }
  0x86   :  { %64 = vst.msk [vmem:[#allocation0] sm:$0x1] %vm63_vm10, %v62_v25  }
  0x88   :  { %v68_v26 = vpop.permute.xlu0 %67   ;;  %v74_v27 = vpop.permute.xlu1 %73  }
  0x89   :  { %70 = vst.msk [vmem:[#allocation0] sm:$0x1] %vm69_vm11, %v68_v26  }
  0x8a   :  { %76 = vst.msk [vmem:[#allocation0] sm:$0x1] %vm75_vm12, %v74_v27  }
  0x8c   :  { %v80_v28 = vpop.permute.xlu0 %79   ;;  %v86_v29 = vpop.permute.xlu1 %85  }
  0x8d   :  { %82 = vst.msk [vmem:[#allocation0] sm:$0x1] %vm81_vm13, %v80_v28  }
  0x8e   :  { %88 = vst.msk [vmem:[#allocation0] sm:$0x1] %vm87_vm14, %v86_v29  }
  0x90   :  { %v92_v30 = vpop.permute.xlu0 %91  }
  0x91   :  { %94 = vst.msk [vmem:[#allocation0] sm:$0x1] %vm93_vm15, %v92_v30  }
  0x98   :  { %v98_v31 = vld [vmem:[#allocation0] sm:$0x1] }
  0x99   :  { %100 = vst [vmem:[%s208_s1] sm:$0x1] %v98_v31 }

// kernel: tile.13
= control target key start
LH: loop header
LB: loop body
LE: loop exit
PB: predicated region body
PF: predicated region fallthrough
CT: control target
= control target key end

     0   :  { %s28_s0 = inlined_call_operand.vmem [shape: f32[4], index: 0, kind: input, shape index: {}]   ;;  %s29_s1 = inlined_call_operand.vmem [shape: f32[16,4], index: 1, kind: output, shape index: {}]  }
   0x1   :  { %v4_v0 = vld [vmem:[%s28_s0] ss:$0 sm:$0xff] }
   0x2   :  { %5 = vst [vmem:[%s29_s1] sm:$0xff] %v4_v0  ;;  %8 = vst [vmem:[%s29_s1 + $0x8] sm:$0xff] %v4_v0 }

// kernel: _lambda_.1
= control target key start
LH: loop header
LB: loop body
LE: loop exit
PB: predicated region body
PF: predicated region fallthrough
CT: control target
= control target key end

     0   :  { %8 = vsyncpa [#allocation3], 0  ;;  %s6210_s0 = inlined_call_operand.hbm [shape: f32[128,64], index: 0, kind: input, shape index: {}]   ;;  %s6211_s1 = inlined_call_operand.vmem [shape: f32[1,64], index: 1, kind: input, shape index: {}]   ;;  %s6212_s2 = inlined_call_operand.vmem [shape: f32[1,64], index: 2, kind: input, shape index: {}]   ;;  %s6213_s3 = inlined_call_operand.vmem [shape: f32[128,64], index: 3, kind: output, shape index: {}]  }
   0x1   :  { %10 = vsyncpa [#allocation3 + $0x1], 0  ;;  %s5061_s12 = smov 0   ;;  %s5063_s13 = smov 0  }
   0x2   :  { %s5065_s14 = smov 0   ;;  %s5067_s15 = smov 0  }
   0x3 LB: > { %s3593_s16 = sadd.s32 4294967295, %s5034_s15   ;;  %s5081_s17 = sadd.s32 1, %s5034_s15   ;;  %s5034_s15 = sphi %s5067_s15, %s6259_s15   ;;  %s5030_s14 = sphi %s5065_s14, %s6258_s14   ;;  %s5026_s13 = sphi %s5063_s13, %s6257_s13   ;;  %s5022_s12 = sphi %s5061_s12, %s6256_s12  }
   0x4   : > { %s20_s18 = ssub.s32 %s5034_s15, %s5081_s17  ;;  %s23_s19 = sadd.s32 1, %s5030_s14 }
   0x5   : > { %p21_p0 = scmp.eq.s32.totalorder %s20_s18, 0  ;;  %p30_p1 = scmp.ne.s32.totalorder %s5030_s14, %s5026_s13 }
   0x6   : > { %p31_p2 = scmp.eq.s32.totalorder %s5034_s15, 0  ;;  %p36_p3 = scmp.ne.s32.totalorder %s5026_s13, %s5022_s12 }
   0x7   : > { %s5091_s20 = scalar_select %p21_p0, %s5030_s14, %s23_s19  }
   0x8   : > { %p32_p4 = por %p31_p2, %p30_p1  ;;  %p37_p5 = scmp.eq.s32.totalorder %s3593_s16, 0 }
   0x9   : > { %p4917_p6 = scmp.lt.s32.totalorder %s5034_s15, 2  ;;  %s134_s22 = sand.u32 1, %s5030_s14  }
   0xa   : > { %p5096_p7 = por %p37_p5, %p36_p3  ;;  %s3597_s23 = sshll.u32 %s134_s22, 6 }
   0xb   : > { %s3668_s24 = sshll.u32 %s5034_s15, 10  ;;  %s138_s28 = scalar_lea.vmem [#allocation2], %s3597_s23 }
   0xc   : > { %s5105_s27 = scalar_lea.hbm %s6210_s0, %s3668_s24  ;;  %s145_s29 = sshll.u32 %s138_s28, 4  ;;  %s5107_s29 = int_to_ptr.vmem [resolvable:$true] %s145_s29 }
   0xd   : > { %p5109_p8 = pnand %p4917_p6, %p32_p4  ;;  %s5114_s4 = scalar_lea.sflag [#allocation3], %s134_s22 }
   0xe   : > { %s4970_s5 = scalar_lea.hbm %s5105_s27, 1024  ;;  %s4975_s8 = scalar_lea.hbm %s6210_s0, 2048 }
   0xf   : > { %p4971_p10 = scmp.ne.s32.totalorder %s5105_s27, %s4970_s5  ;;  %p4972_p11 = pneg %p5109_p8 }
  0x10   : > { %p4976_p0 = scmp.lt.u32.totalorder %s5105_s27, %s6210_s0  ;;  %p4977_p1 = scmp.lt.u32.totalorder %s4975_s8, %s4970_s5 }
  0x11   : > { %p4973_p12 = pnand %p4972_p11, %p4971_p10  ;;  %p4979_p3 = scmp.lt.u32.totalorder %s4970_s5, %s5105_s27 }
  0x12   : > { %p4978_p2 = por %p4977_p1, %p4976_p0 }
  0x13   : > { %p4974_p13 = pneg %p4973_p12 }
  0x14   : > { %p4980_p4 = por %p4979_p3, %p4978_p2 }
  0x16   : > { %p4981_p5 = pnand %p4980_p4, %p4974_p13 }
  0x18   : > { %4984 = shalt.err (!%p4981_p5)
}
  0x19   : > { %s4985_s11 = scalar_lea.vmem %s5107_s29, 1024  ;;  %s5036_s12 = smov [#allocation2]  }
  0x1a   : > { %p4986_p6 = scmp.ne.s32.totalorder %s5107_s29, %s4985_s11  ;;  %s4990_s18 = sshll.u32 %s5036_s12, 4  ;;  %s4991_s18 = int_to_ptr.vmem [resolvable:$false] %s4990_s18 }
  0x1b   : > { %s4992_s19 = scalar_lea.vmem %s4991_s18, 2048  ;;  %p4993_p9 = scmp.lt.s32.totalorder %s5107_s29, %s4991_s18 }
  0x1c   : > { %p4988_p10 = pnand %p4986_p6, %p4972_p11  ;;  %p4994_p0 = scmp.lt.s32.totalorder %s4992_s19, %s4985_s11 }
  0x1e   : > { %p4989_p12 = pneg %p4988_p10  ;;  %p4995_p1 = por %p4994_p0, %p4993_p9 }
  0x20   : > { %p4996_p2 = pnand %p4995_p1, %p4989_p12 }
  0x22   : > { %4999 = shalt.err (!%p4996_p2)
}
  0x23   : > { %s5037_s22 = smov 128   ;;  %s5038_s23 = smov 8  }
  0x24   : > { %4916 = dma.hbm_to_vmem [thread:$0]  (!%p5109_p8), %s5105_s27, 1024, %s5107_s29, %s5114_s4, %s5037_s22, %s5037_s22, %s5038_s23  }
  0x25   : > { %p153_p11 = scmp.lt.s32.totalorder %s5034_s15, 3  ;;  %p6225_p13 = scmp.ge.s32.totalorder %s5034_s15, 1 }
  0x27   : > { %p154_p3 = pnand %p6225_p13, %p153_p11 }
  0x28   : > { %s159_s24 = sand.u32 (!%p154_p3), 1, %s5026_s13  }
  0x29   : > { %157 = sbr.rel (%p154_p3) target bundleno = 1323 (0x52b), region = 32  ;;  %s3601_s25 = sshll.u32 (!%p154_p3), %s159_s24, 6 }
  0x2a   : > { %s160_s26 = scalar_lea.sflag (!%p154_p3), [#allocation3], %s159_s24  ;;  %s5146_s28 = scalar_lea.vmem (!%p154_p3), [#allocation2], %s3601_s25 }
  0x30   : > { %5017 = dma.done.wait (%p5096_p7), %s160_s26, 1024  }
  0x31   : > { %5019 = vsyncadd (%p5096_p7), %s160_s26, 4294966272  ;;  %v201_v0 = vlaneseq  ;;  %vm258_vm0 = vcmask 523264   ;;  %v5188_v12 = vld [vmem:[%s5146_s28] sm:$0xff]  ;;  %v5191_v13 = vld [vmem:[%s5146_s28 + $0x8] sm:$0xff]  ;;  %v6215_v21 = vmov 0.0   ;;  %s3602_s21 = sshll.u32 %s3593_s16, 3 }
  0x32   : > { %v5202_v15 = vld [vmem:[%s5146_s28 + $0x10] sm:$0xff]  ;;  %v5216_v16 = vld [vmem:[%s5146_s28 + $0x18] sm:$0xff]  ;;  %v5219_v17 = vld [vmem:[%s5146_s28 + $0x20] sm:$0xff]  ;;  %v260_v19 = vsel %vm258_vm0, %v5188_v12, 0  ;;  %v263_v20 = vsel %vm258_vm0, %v5191_v13, 0  ;;  %p188_p7 = scmp.lt.s32.totalorder %s3602_s21, 15 }
  0x33   : > { %v5152_v1 = vshrl.u32 %v201_v0, 7  ;;  %v5154_v2 = vand.u32 127, %v201_v0  ;;  %v5040_v24 = vmov 1.0|1.0   ;;  %v5242_v25 = vand.u32 4294901760, %v260_v19  ;;  %v5366_v63 = vld [vmem:[%s5146_s28 + $0x28] sm:$0xff] }
  0x34   : > { %v5244_v26 = vand.u32 4294901760, %v263_v20  ;;  %v266_v29 = vsel %vm258_vm0, %v5202_v15, 0  ;;  %v269_v30 = vsel %vm258_vm0, %v5216_v16, 0  ;;  %v272_v32 = vsel %vm258_vm0, %v5219_v17, 0  ;;  %v5393_v14 = vld [vmem:[%s5146_s28 + $0x30] sm:$0xff]  ;;  %s6261_s21 = smov (!%p188_p7, %s3602_s21), 15 }
  0x35   : > { %v5157_v3 = vadd.s32 8, %v5152_v1  ;;  %v5160_v4 = vmul.u32 4, %v5154_v2  ;;  %v204_v5 = vadd.s32 16, %v5152_v1  ;;  %v205_v6 = vadd.s32 24, %v5152_v1  ;;  %s3603_s27 = sshll.u32 %s6261_s21, 3 }
  0x36   : > { %v206_v7 = vadd.s32 32, %v5152_v1  ;;  %v207_v8 = vadd.s32 40, %v5152_v1  ;;  %v5172_v10 = vadd.s32 48, %v5152_v1  ;;  %v5175_v11 = vadd.s32 56, %v5152_v1  ;;  %s6173_s6 = scalar_lea.vmem %s6213_s3, %s3603_s27 }
  0x37   : > { %vm213_vm1 = vcmp.ge.s32.totalorder %v5152_v1, %v5160_v4  ;;  %v5169_v9 = vadd.s32 4, %v5160_v4  ;;  %vm214_vm2 = vcmp.ge.s32.totalorder %v5157_v3, %v5160_v4  ;;  %vm215_vm3 = vcmp.ge.s32.totalorder %v204_v5, %v5160_v4 }
  0x38   : > { %vm216_vm4 = vcmp.ge.s32.totalorder %v205_v6, %v5160_v4  ;;  %vm217_vm7 = vcmp.ge.s32.totalorder %v206_v7, %v5160_v4  ;;  %vm219_vm15 = vcmp.ge.s32.totalorder %v5172_v10, %v5160_v4  ;;  %v5269_v34 = vsub.f32 %v260_v19, %v5242_v25 }
  0x39   : > { %vm222_vm5 = vcmp.lt.s32.totalorder %v5152_v1, %v5169_v9  ;;  %vm223_vm6 = vcmp.lt.s32.totalorder %v5157_v3, %v5169_v9  ;;  %vm224_vm10 = vcmp.lt.s32.totalorder %v204_v5, %v5169_v9  ;;  %vm225_vm11 = vcmp.lt.s32.totalorder %v205_v6, %v5169_v9 }
  0x3a   : > { %vm5193_vm9 = vmand %vm213_vm1, %vm222_vm5  ;;  %vm226_vm12 = vcmp.lt.s32.totalorder %v206_v7, %v5169_v9  ;;  %vm220_vm1 = vcmp.ge.s32.totalorder %v5175_v11, %v5160_v4  ;;  %vm228_vm5 = vcmp.lt.s32.totalorder %v5172_v10, %v5169_v9  ;;  %vm229_vm8 = vcmp.lt.s32.totalorder %v5175_v11, %v5169_v9 }
  0x3b   : > { %vm231_vm14 = vmand %vm214_vm2, %vm223_vm6  ;;  %v238_v22 = vsel %vm5193_vm9, 1.0, %v6215_v21  ;;  %v5272_v35 = vsub.f32 %v263_v20, %v5244_v26  ;;  %v5287_v39 = vand.u32 4294901760, %v266_v29  ;;  %v5289_v40 = vand.u32 4294901760, %v269_v30 }
  0x3c   : > { %vm5223_vm13 = vmpackc.low %vm231_vm14, %vm5193_vm9  ;;  %v239_v23 = vsel %vm231_vm14, 1.0, %v6215_v21  ;;  %v5246_v27 = vsub.f32 %v238_v22, %v238_v22  ;;  %vm6234_vm9 = vcmp.lt.s32.totalorder %v207_v8, %v5169_v9  ;;  %v350_v44 = vand.u32 4294901760, %v5269_v34 }
  0x3d   : > { %4510 = vmatprep.subr.msk.bf16.mxu0 %vm5223_vm13, %v5040_v24  ;;  %vm232_vm2 = vmand %vm215_vm3, %vm224_vm10  ;;  %v5248_v28 = vsub.f32 %v239_v23, %v239_v23  ;;  %vm6235_vm10 = vcmp.ge.s32.totalorder %v207_v8, %v5160_v4  ;;  %v360_v45 = vand.u32 4294901760, %v5272_v35  ;;  %v5322_v49 = vsub.f32 %v266_v29, %v5287_v39  ;;  %v5410_v29 = vld [vmem:[%s5146_s28 + $0x38] sm:$0xff] }
  0x3e   : > { %4512 = vmatpush3.bf16.msk.msra.mxu0 %vm5223_vm13, %v5040_v24  ;;  %vm233_vm6 = vmand %vm216_vm4, %vm225_vm11  ;;  %v240_v31 = vsel %vm232_vm2, 1.0, %v6215_v21  ;;  %v430_v36 = vand.u32 4294901760, %v5246_v27  ;;  %v5325_v50 = vsub.f32 %v269_v30, %v5289_v40  ;;  %v351_v54 = vsub.f32 %v5269_v34, %v350_v44 }
  0x3f   : > { %vm5264_vm3 = vmpackc.low %vm233_vm6, %vm232_vm2  ;;  %v436_v37 = vand.u32 4294901760, %v5248_v28  ;;  %v241_v41 = vsel %vm233_vm6, 1.0, %v6215_v21  ;;  %v5292_v42 = vsub.f32 %v240_v31, %v240_v31  ;;  %v361_v55 = vsub.f32 %v5272_v35, %v360_v45 }
  0x40   : > { %4514 = vmatprep.subr.msk.bf16.mxu0 %vm5264_vm3, %v5040_v24  ;;  %vm5283_vm4 = vmand %vm217_vm7, %vm226_vm12  ;;  %v431_v46 = vsub.f32 %v5246_v27, %v430_v36  ;;  %v5328_v52 = vsub.f32 %v241_v41, %v241_v41  ;;  %v370_v59 = vand.u32 4294901760, %v5322_v49  ;;  %v6217_v60 = vand.u32 4294901760, %v5325_v50 }
  0x41   : > { %vm5298_vm11 = vmand %vm6235_vm10, %vm6234_vm9  ;;  %v437_v47 = vsub.f32 %v5248_v28, %v436_v37  ;;  %v442_v51 = vand.u32 4294901760, %v5292_v42  ;;  %v352_v4 = vand.u32 4294901760, %v351_v54  ;;  %v362_v5 = vand.u32 4294901760, %v361_v55 }
  0x42   : > { %4516 = vmatpush3.bf16.msk.msra.mxu0 %vm5264_vm3, %v5040_v24  ;;  %vm5317_vm7 = vmpackc.low %vm5298_vm11, %vm5283_vm4  ;;  %v432_v56 = vand.u32 4294901760, %v431_v46  ;;  %v448_v62 = vand.u32 4294901760, %v5328_v52  ;;  %v5378_v7 = vand.u32 4294901760, %v272_v32  ;;  %v371_v8 = vsub.f32 %v5322_v49, %v370_v59 }
  0x43   : > { %4518 = vmatprep.subr.msk.bf16.mxu0 %vm5317_vm7, %v5040_v24  ;;  %vm5339_vm12 = vmand %vm219_vm15, %vm228_vm5  ;;  %v438_v57 = vand.u32 4294901760, %v437_v47  ;;  %v443_v61 = vsub.f32 %v5292_v42, %v442_v51  ;;  %v381_v9 = vsub.f32 %v5325_v50, %v6217_v60  ;;  %3997 = vmatprep.mubr.f32.mxu0 %v352_v4  ;;  %v275_v20 = vsel %vm258_vm0, %v5366_v63, 0 }
  0x44   : > { %vm5355_vm14 = vmand %vm220_vm1, %vm229_vm8  ;;  %v449_v11 = vsub.f32 %v5328_v52, %v448_v62  ;;  %v5399_v19 = vsub.f32 %v272_v32, %v5378_v7  ;;  %v242_v22 = vsel %vm5283_vm4, 1.0, %v6215_v21  ;;  %v243_v23 = vsel %vm5298_vm11, 1.0, %v6215_v21 }
  0x45   : > { %vm5372_vm8 = vmpackc.low %vm5355_vm14, %vm5339_vm12  ;;  %v5376_v6 = vpack.c.bf16 %v438_v57, %v432_v56  ;;  %v444_v10 = vand.u32 4294901760, %v443_v61  ;;  %v372_v30 = vand.u32 4294901760, %v371_v8  ;;  %v382_v31 = vand.u32 4294901760, %v381_v9 }
  0x46   : > { %4520 = vmatpush3.bf16.msk.msra.mxu0 %vm5317_vm7, %v5040_v24  ;;  %v450_v41 = vand.u32 4294901760, %v449_v11  ;;  %v5412_v46 = vand.u32 4294901760, %v275_v20  ;;  %v6214_v32 = vand.u32 4294901760, %v5399_v19  ;;  %v5415_v47 = vsub.f32 %v242_v22, %v242_v22 }
  0x47   : > { %4522 = vmatprep.subr.msk.bf16.mxu0 %vm5372_vm8, %v5040_v24  ;;  %v5417_v54 = vsub.f32 %v243_v23, %v243_v23  ;;  %v278_v38 = vsel %vm258_vm0, %v5393_v14, 0  ;;  %v281_v57 = vsel %vm258_vm0, %v5410_v29, 0  ;;  %v245_v22 = vsel %vm5355_vm14, 1.0, %v6215_v21 }
  0x48   : > { %v5424_v43 = vpack.c.bf16 %v450_v41, %v444_v10  ;;  %v5427_v55 = vsub.f32 %v275_v20, %v5412_v46  ;;  %v5429_v56 = vand.u32 4294901760, %v278_v38  ;;  %v391_v61 = vsub.f32 %v5399_v19, %v6214_v32 }
  0x49   : > { %v6220_v4 = vand.u32 4294901760, %v5415_v47  ;;  %v6218_v8 = vand.u32 4294901760, %v5417_v54  ;;  %v5439_v9 = vand.u32 4294901760, %v281_v57  ;;  %v244_v20 = vsel %vm5339_vm12, 1.0, %v6215_v21 }
  0x4a   : > { %4524 = vmatpush3.bf16.msk.msra.mxu0 %vm5372_vm8, %v5040_v24  ;;  %v6219_v10 = vand.u32 4294901760, %v5427_v55  ;;  %v5443_v11 = vsub.f32 %v278_v38, %v5429_v56  ;;  %v392_v23 = vand.u32 4294901760, %v391_v61  ;;  %v5467_v61 = vsub.f32 %v245_v22, %v245_v22 }
  0x4b   : > { %4526 = vmatprep.subr.bf16.mxu0 %v5376_v6  ;;  %v455_v41 = vsub.f32 %v5415_v47, %v6220_v4  ;;  %v461_v32 = vsub.f32 %v5417_v54, %v6218_v8  ;;  %v5458_v38 = vsub.f32 %v281_v57, %v5439_v9  ;;  %vm1073_vm10 = vcmask 130048  }
  0x4c   : > { %v401_v53 = vsub.f32 %v5427_v55, %v6219_v10  ;;  %v6221_v58 = vand.u32 4294901760, %v5443_v11  ;;  %v472_v10 = vand.u32 4294901760, %v5467_v61 }
  0x4d   : > { %3998 = vmatmul.mubr.f32.vlgmr.msra.gmra.mrb[0].mxu0 %v362_v5  ;;  %v5465_v5 = vsub.f32 %v244_v20, %v244_v20  ;;  %v456_v21 = vand.u32 4294901760, %v455_v41  ;;  %v462_v60 = vand.u32 4294901760, %v461_v32  ;;  %v420_v57 = vand.u32 4294901760, %v5458_v38 }
  0x4e   : > { %4528 = vmatpush3.bf16.msra.mxu0 %v5376_v6  ;;  %4000 = vmatprep.mubr.f32.mxu0 %v372_v30  ;;  %v411_v30 = vsub.f32 %v5443_v11, %v6221_v58  ;;  %v402_v4 = vand.u32 4294901760, %v401_v53  ;;  %v473_v58 = vsub.f32 %v5467_v61, %v472_v10 }
  0x4f   : > { %4530 = vmatprep.subr.bf16.mxu0 %v5424_v43  ;;  %v466_v8 = vand.u32 4294901760, %v5465_v5  ;;  %v5476_v20 = vpack.c.bf16 %v462_v60, %v456_v21  ;;  %v421_v22 = vsub.f32 %v5458_v38, %v420_v57 }
  0x50   : > { %v412_v32 = vand.u32 4294901760, %v411_v30  ;;  %v474_v60 = vand.u32 4294901760, %v473_v58  ;;  %v5510_v58 = vpack.c.bf16 %v5417_v54, %v5415_v47  ;;  %v5518_v30 = vpack.c.bf16 %v5467_v61, %v5465_v5 }
  0x51   : > { %4001 = vmatmul.mubr.f32.gmra.mrb[2].mxu0 %v382_v31  ;;  %v467_v41 = vsub.f32 %v5465_v5, %v466_v8  ;;  %v422_v31 = vand.u32 4294901760, %v421_v22  ;;  %v5558_v22 = vpack.c.bf16 %v436_v37, %v430_v36  ;;  %v6248_v37 = vand.u32 4294901760, %v5325_v50 }
  0x52   : > { %4532 = vmatpush3.bf16.msra.mxu0 %v5424_v43  ;;  %4003 = vmatprep.mubr.f32.mxu0 %v392_v23  ;;  %v5494_v23 = vpack.c.bf16 %v5248_v28, %v5246_v27  ;;  %v5571_v27 = vpack.c.bf16 %v448_v62, %v442_v51  ;;  %v6246_v28 = vand.u32 4294901760, %v5415_v47  ;;  %v246_v51 = vmul.u32 4, %v5152_v1 }
  0x53   : > { %4534 = vmatprep.subr.bf16.mxu0 %v5476_v20  ;;  %v468_v21 = vand.u32 4294901760, %v467_v41  ;;  %v6254_v1 = vmov 0.0  }
  0x54   : > { %vm248_vm1 = vcmp.ge.s32.totalorder %v5154_v2, %v246_v51 }
  0x55   : > { %4004 = vmatmul.mubr.f32.gmra.mrb[4].mxu0 %v402_v4  ;;  %v5490_v53 = vpack.c.bf16 %v474_v60, %v468_v21  ;;  %v5502_v4 = vpack.c.bf16 %v5328_v52, %v5292_v42  ;;  %v5595_v42 = vpack.c.bf16 %v472_v10, %v466_v8 }
  0x56   : > { %4536 = vmatpush3.bf16.msra.mxu0 %v5476_v20  ;;  %4006 = vmatprep.mubr.f32.mxu0 %v412_v32 }
  0x57   : > { %4538 = vmatprep.subr.bf16.mxu0 %v5490_v53 }
  0x59   : > { %4007 = vmatmul.mubr.f32.gmra.mrb[6].mxu0 %v422_v31 }
  0x5a   : > { %4540 = vmatpush3.bf16.msra.mxu0 %v5490_v53  ;;  %4025 = vmatprep.mubr.f32.mxu0 %v5242_v25 }
  0x5b   : > { %4542 = vmatprep.subr.bf16.mxu0 %v5494_v23 }
  0x5d   : > { %4026 = vmatmul.mubr.f32.vlgmr.msra.gmra.mrb[0].mxu0 %v5244_v26 }
  0x5e   : > { %4544 = vmatpush3.bf16.msra.mxu0 %v5494_v23  ;;  %4028 = vmatprep.mubr.f32.mxu0 %v5287_v39 }
  0x5f   : > { %4546 = vmatprep.subr.bf16.mxu0 %v5502_v4 }
  0x61   : > { %4029 = vmatmul.mubr.f32.gmra.mrb[2].mxu0 %v5289_v40 }
  0x62   : > { %4548 = vmatpush3.bf16.msra.mxu0 %v5502_v4  ;;  %4031 = vmatprep.mubr.f32.mxu0 %v5378_v7 }
  0x63   : > { %4550 = vmatprep.subr.bf16.mxu0 %v5510_v58 }
  0x65   : > { %4032 = vmatmul.mubr.f32.gmra.mrb[4].mxu0 %v5412_v46 }
  0x66   : > { %4552 = vmatpush3.bf16.msra.mxu0 %v5510_v58  ;;  %4034 = vmatprep.mubr.f32.mxu0 %v5429_v56 }
  0x67   : > { %4554 = vmatprep.subr.bf16.mxu0 %v5518_v30 }
  0x69   : > { %4035 = vmatmul.mubr.f32.gmra.mrb[6].mxu0 %v5439_v9 }
  0x6a   : > { %4556 = vmatpush3.bf16.msra.mxu0 %v5518_v30  ;;  %4053 = vmatprep.mubr.f32.mxu0 %v5269_v34  ;;  %v6247_v34 = vand.u32 4294901760, %v5417_v54 }
  0x6b   : > { %4558 = vmatprep.subr.msk.bf16.mxu0 %vm5223_vm13, %v5040_v24 }
  0x6c   : > { %v5583_v36 = vpack.c.bf16 %v6247_v34, %v6246_v28 }
  0x6d   : > { %4054 = vmatmul.mubr.f32.vlgmr.msra.gmra.mrb[0].mxu0 %v5272_v35  ;;  %v6249_v35 = vand.u32 4294901760, %v5399_v19 }
  0x6e   : > { %4560 = vmatpush3.bf16.msk.msra.mxu0 %vm5223_vm13, %v5040_v24  ;;  %4056 = vmatprep.mubr.f32.mxu0 %v5322_v49  ;;  %v247_v49 = vmul.u32 4, %v5157_v3 }
  0x6f   : > { %4562 = vmatprep.subr.msk.bf16.mxu0 %vm5264_vm3, %v5040_v24 }
  0x70   : > { %vm249_vm15 = vcmp.ge.s32.totalorder %v5154_v2, %v247_v49 }
  0x71   : > { %4057 = vmatmul.mubr.f32.gmra.mrb[2].mxu0 %v5325_v50  ;;  %v251_v50 = vadd.s32 4, %v247_v49 }
  0x72   : > { %4564 = vmatpush3.bf16.msk.msra.mxu0 %vm5264_vm3, %v5040_v24  ;;  %4059 = vmatprep.mubr.f32.mxu0 %v5399_v19 }
  0x73   : > { %4566 = vmatprep.subr.msk.bf16.mxu0 %vm5317_vm7, %v5040_v24  ;;  %vm253_vm2 = vcmp.lt.s32.totalorder %v5154_v2, %v251_v50 }
  0x74   : > { %vm255_vm4 = vmand %vm249_vm15, %vm253_vm2 }
  0x75   : > { %4060 = vmatmul.mubr.f32.gmra.mrb[4].mxu0 %v5427_v55  ;;  %v257_v3 = vsel %vm255_vm4, 1.0, %v6254_v1 }
  0x76   : > { %4568 = vmatpush3.bf16.msk.msra.mxu0 %vm5317_vm7, %v5040_v24  ;;  %4062 = vmatprep.mubr.f32.mxu0 %v5443_v11 }
  0x77   : > { %4570 = vmatprep.subr.msk.bf16.mxu0 %vm5372_vm8, %v5040_v24 }
  0x79   : > { %4063 = vmatmul.mubr.f32.gmra.mrb[6].mxu0 %v5458_v38 }
  0x7a   : > { %4572 = vmatpush3.bf16.msk.msra.mxu0 %vm5372_vm8, %v5040_v24  ;;  %4081 = vmatprep.mubr.f32.mxu0 %v350_v44  ;;  %v6250_v44 = vand.u32 4294901760, %v5427_v55 }
  0x7b   : > { %4574 = vmatprep.subr.bf16.mxu0 %v5558_v22 }
  0x7d   : > { %4082 = vmatmul.mubr.f32.vlgmr.msra.gmra.mrb[0].mxu0 %v360_v45  ;;  %v6251_v45 = vand.u32 4294901760, %v5443_v11 }
  0x7e   : > { %4576 = vmatpush3.bf16.msra.mxu0 %v5558_v22  ;;  %4084 = vmatprep.mubr.f32.mxu0 %v370_v59 }
  0x7f   : > { %4578 = vmatprep.subr.bf16.mxu0 %v5571_v27 }
  0x81   : > { %4085 = vmatmul.mubr.f32.gmra.mrb[2].mxu0 %v6248_v37 }
  0x82   : > { %4580 = vmatpush3.bf16.msra.mxu0 %v5571_v27  ;;  %4087 = vmatprep.mubr.f32.mxu0 %v6249_v35 }
  0x83   : > { %4582 = vmatprep.subr.bf16.mxu0 %v5583_v36 }
  0x85   : > { %4088 = vmatmul.mubr.f32.gmra.mrb[4].mxu0 %v6250_v44 }
  0x86   : > { %4584 = vmatpush3.bf16.msra.mxu0 %v5583_v36  ;;  %4090 = vmatprep.mubr.f32.mxu0 %v6251_v45 }
  0x87   : > { %4586 = vmatprep.subr.bf16.mxu0 %v5595_v42 }
  0x89   : > { %4091 = vmatmul.mubr.f32.gmra.mrb[6].mxu0 %v420_v57 }
  0x8a   : > { %4588 = vmatpush3.bf16.msra.mxu0 %v5595_v42  ;;  %4109 = vmatprep.mubr.f32.mxu0 %v5242_v25 }
  0x8b   : > { %4590 = vmatprep.subr.msk.bf16.mxu0 %vm5223_vm13, %v5040_v24 }
  0x8d   : > { %4110 = vmatmul.mubr.f32.vlgmr.msra.gmra.mrb[0].mxu0 %v5244_v26 }
  0x8e   : > { %4592 = vmatpush3.bf16.msk.msra.mxu0 %vm5223_vm13, %v5040_v24  ;;  %4112 = vmatprep.mubr.f32.mxu0 %v5287_v39 }
  0x8f   : > { %4594 = vmatprep.subr.msk.bf16.mxu0 %vm5264_vm3, %v5040_v24 }
  0x91   : > { %4113 = vmatmul.mubr.f32.gmra.mrb[2].mxu0 %v5289_v40 }
  0x92   : > { %4596 = vmatpush3.bf16.msk.msra.mxu0 %vm5264_vm3, %v5040_v24  ;;  %4115 = vmatprep.mubr.f32.mxu0 %v5378_v7 }
  0x93   : > { %4598 = vmatprep.subr.msk.bf16.mxu0 %vm5317_vm7, %v5040_v24 }
  0x95   : > { %4116 = vmatmul.mubr.f32.gmra.mrb[4].mxu0 %v5412_v46 }
  0x96   : > { %4600 = vmatpush3.bf16.msk.msra.mxu0 %vm5317_vm7, %v5040_v24  ;;  %4118 = vmatprep.mubr.f32.mxu0 %v5429_v56 }
  0x97   : > { %4602 = vmatprep.subr.msk.bf16.mxu0 %vm5372_vm8, %v5040_v24 }
  0x99   : > { %4119 = vmatmul.mubr.f32.gmra.mrb[6].mxu0 %v5439_v9 }
  0x9a   : > { %4604 = vmatpush3.bf16.msk.msra.mxu0 %vm5372_vm8, %v5040_v24  ;;  %4137 = vmatprep.mubr.f32.mxu0 %v5242_v25  ;;  %v250_v25 = vadd.s32 4, %v246_v51 }
  0x9c   : > { %vm252_vm5 = vcmp.lt.s32.totalorder %v5154_v2, %v250_v25 }
  0x9d   : > { %4138 = vmatmul.mubr.f32.vlgmr.msra.gmra.mrb[0].mxu0 %v5244_v26  ;;  %vm254_vm6 = vmand %vm248_vm1, %vm252_vm5 }
  0x9e   : > { %4140 = vmatprep.mubr.f32.mxu0 %v5287_v39  ;;  %vm5652_vm9 = vmpackc.low %vm255_vm4, %vm254_vm6  ;;  %v256_v2 = vsel %vm254_vm6, 1.0, %v6254_v1 }
  0x9f   : > { %4606 = vmatprep.subr.msk.bf16.mxu1 %vm5652_vm9, %v5040_v24  ;;  %4726 = vmatprep.subr.msk.bf16.mxu0 %vm5652_vm9, %v5040_v24  ;;  %v1244_v39 = vsub.f32 %v256_v2, %v256_v2 }
  0xa0   : > { %4608 = vmatpush3.bf16.msk.msra.mxu1 %vm5652_vm9, %v5040_v24  ;;  %4728 = vmatpush3.bf16.msk.msra.mxu0 %vm5652_vm9, %v5040_v24 }
  0xa1   : > { %4141 = vmatmul.mubr.f32.gmra.mrb[2].mxu0 %v5289_v40  ;;  %v1250_v40 = vsub.f32 %v257_v3, %v257_v3  ;;  %v1245_v52 = vand.u32 4294901760, %v1244_v39 }
  0xa2   : > { %4143 = vmatprep.mubr.f32.mxu0 %v5378_v7 }
  0xa3   : > { %v1251_v59 = vand.u32 4294901760, %v1250_v40  ;;  %v1246_v62 = vsub.f32 %v1244_v39, %v1245_v52  ;;  %v5674_v54 = vpack.c.bf16 %v1250_v40, %v1244_v39 }
  0xa5   : > { %4144 = vmatmul.mubr.f32.gmra.mrb[4].mxu0 %v5412_v46  ;;  %v1252_v7 = vsub.f32 %v1250_v40, %v1251_v59  ;;  %v1247_v19 = vand.u32 4294901760, %v1246_v62  ;;  %v5676_v55 = vpack.c.bf16 %v1251_v59, %v1245_v52 }
  0xa6   : > { %4146 = vmatprep.mubr.f32.mxu0 %v5429_v56 }
  0xa7   : > { %v1253_v46 = vand.u32 4294901760, %v1252_v7 }
  0xa9   : > { %4147 = vmatmul.mubr.f32.gmra.mrb[6].mxu0 %v5439_v9  ;;  %v5670_v47 = vpack.c.bf16 %v1253_v46, %v1247_v19 }
  0xab   : > { %4610 = vmatprep.subr.bf16.mxu1 %v5670_v47  ;;  %4730 = vmatprep.subr.bf16.mxu0 %v5670_v47 }
 0x170   : > { %v4139_v56 = vpop.f32.mrb[0].mxu0 }
 0x171   : > { %v1078_v8 = vsel %vm1073_vm10, %v4139_v56, 0  ;;  %v1027_v9 = vpop.f32.mrb[1].mxu0 }
 0x172   : > { %v5679_v10 = vand.u32 4294901760, %v1078_v8  ;;  %v1075_v11 = vsel %vm1073_vm10, %v1027_v9, 0 }
 0x173   : > { %v5682_v38 = vand.u32 4294901760, %v1075_v11 }
 0x174   : > { %v5685_v5 = vsub.f32 %v1078_v8, %v5679_v10  ;;  %v4142_v61 = vpop.f32.mrb[2].mxu0 }
 0x175   : > { %v5688_v57 = vsub.f32 %v1075_v11, %v5682_v38  ;;  %v1084_v32 = vsel %vm1073_vm10, %v4142_v61, 0  ;;  %v1039_v41 = vpop.f32.mrb[3].mxu0 }
 0x176   : > { %v1175_v21 = vand.u32 4294901760, %v5685_v5  ;;  %v5692_v60 = vand.u32 4294901760, %v1084_v32  ;;  %v1081_v31 = vsel %vm1073_vm10, %v1039_v41, 0 }
 0x177   : > { %v5695_v28 = vand.u32 4294901760, %v1081_v31  ;;  %v1165_v34 = vand.u32 4294901760, %v5688_v57 }
 0x178   : > { %v5699_v37 = vsub.f32 %v1084_v32, %v5692_v60  ;;  %v4145_v35 = vpop.f32.mrb[4].mxu0  ;;  %v1176_v44 = vsub.f32 %v5685_v5, %v1175_v21 }
 0x179   : > { %v5705_v45 = vsub.f32 %v1081_v31, %v5695_v28  ;;  %v1090_v49 = vsel %vm1073_vm10, %v4145_v35, 0  ;;  %v1051_v50 = vpop.f32.mrb[5].mxu0  ;;  %v1166_v51 = vsub.f32 %v5688_v57, %v1165_v34 }
 0x17a   : > { %v6222_v25 = vand.u32 4294901760, %v5699_v37  ;;  %v5712_v1 = vand.u32 4294901760, %v1090_v49  ;;  %v1087_v2 = vsel %vm1073_vm10, %v1051_v50, 0  ;;  %v1177_v62 = vand.u32 4294901760, %v1176_v44 }
 0x17b   : > { %v1185_v3 = vand.u32 4294901760, %v5705_v45  ;;  %v5716_v39 = vand.u32 4294901760, %v1087_v2  ;;  %v1167_v40 = vand.u32 4294901760, %v1166_v51 }
 0x17c   : > { %v5719_v52 = vsub.f32 %v1090_v49, %v5712_v1  ;;  %v4148_v59 = vpop.f32.mrb[6].mxu0  ;;  %v1196_v7 = vsub.f32 %v5699_v37, %v6222_v25 }
 0x17d   : > { %v1204_v19 = vsub.f32 %v1087_v2, %v5716_v39  ;;  %v1096_v46 = vsel %vm1073_vm10, %v4148_v59, 0  ;;  %v1063_v56 = vpop.f32.mrb[7].mxu0  ;;  %4153 = vmatprep.mubr.f32.mxu1 %v1167_v40  ;;  %v1186_v8 = vsub.f32 %v5705_v45, %v1185_v3 }
 0x17e   : > { %v1215_v9 = vand.u32 4294901760, %v5719_v52  ;;  %v5728_v11 = vand.u32 4294901760, %v1096_v46  ;;  %v1093_v61 = vsel %vm1073_vm10, %v1063_v56, 0  ;;  %4154 = vmatmul.mubr.f32.vlgmr.msra.gmra.mrb[0].mxu1 %v1177_v62  ;;  %v1197_v44 = vand.u32 4294901760, %v1196_v7 }
 0x17f   : > { %v1205_v32 = vand.u32 4294901760, %v1204_v19  ;;  %v5731_v41 = vand.u32 4294901760, %v1093_v61  ;;  %4612 = vmatpush3.bf16.msra.mxu1 %v5670_v47  ;;  %v1187_v31 = vand.u32 4294901760, %v1186_v8 }
 0x180   : > { %v1234_v35 = vsub.f32 %v1096_v46, %v5728_v11  ;;  %v1216_v49 = vsub.f32 %v5719_v52, %v1215_v9  ;;  %4614 = vmatprep.subr.bf16.mxu1 %v5674_v54 }
 0x181   : > { %v1224_v50 = vsub.f32 %v1093_v61, %v5731_v41  ;;  %4156 = vmatprep.mubr.f32.mxu1 %v1187_v31  ;;  %v1206_v51 = vsub.f32 %v1204_v19, %v1205_v32 }
 0x182   : > { %v1235_v2 = vand.u32 4294901760, %v1234_v35  ;;  %4157 = vmatmul.mubr.f32.gmra.mrb[2].mxu1 %v1197_v44  ;;  %v1217_v62 = vand.u32 4294901760, %v1216_v49 }
 0x183   : > { %v1225_v40 = vand.u32 4294901760, %v1224_v50  ;;  %v1207_v59 = vand.u32 4294901760, %v1206_v51 }
 0x184   : > { %v1236_v56 = vsub.f32 %v1234_v35, %v1235_v2 }
 0x185   : > { %4159 = vmatprep.mubr.f32.mxu1 %v1207_v59  ;;  %v1226_v25 = vsub.f32 %v1224_v50, %v1225_v40 }
 0x186   : > { %4160 = vmatmul.mubr.f32.gmra.mrb[4].mxu1 %v1217_v62  ;;  %v1237_v46 = vand.u32 4294901760, %v1236_v56 }
 0x187   : > { %v1227_v8 = vand.u32 4294901760, %v1226_v25 }
 0x189   : > { %4162 = vmatprep.mubr.f32.mxu1 %v1227_v8 }
 0x18a   : > { %4163 = vmatmul.mubr.f32.gmra.mrb[6].mxu1 %v1237_v46 }
 0x18b   : > { %4169 = vmatprep.mubr.f32.mxu1 %v5682_v38 }
 0x18e   : > { %4170 = vmatmul.mubr.f32.vlgmr.msra.gmra.mrb[0].mxu1 %v5679_v10 }
 0x18f   : > { %4172 = vmatprep.mubr.f32.mxu1 %v5695_v28  ;;  %4616 = vmatpush3.bf16.msra.mxu1 %v5674_v54 }
 0x190   : > { %4618 = vmatprep.subr.msk.bf16.mxu1 %vm5652_vm9, %v5040_v24 }
 0x192   : > { %4173 = vmatmul.mubr.f32.gmra.mrb[2].mxu1 %v5692_v60 }
 0x193   : > { %4175 = vmatprep.mubr.f32.mxu1 %v5716_v39 }
 0x196   : > { %4176 = vmatmul.mubr.f32.gmra.mrb[4].mxu1 %v5712_v1 }
 0x197   : > { %4178 = vmatprep.mubr.f32.mxu1 %v5731_v41 }
 0x19a   : > { %4179 = vmatmul.mubr.f32.gmra.mrb[6].mxu1 %v5728_v11 }
 0x19b   : > { %4185 = vmatprep.mubr.f32.mxu1 %v5688_v57 }
 0x19e   : > { %4186 = vmatmul.mubr.f32.vlgmr.msra.gmra.mrb[0].mxu1 %v5685_v5 }
 0x19f   : > { %4188 = vmatprep.mubr.f32.mxu1 %v5705_v45  ;;  %4620 = vmatpush3.bf16.msk.msra.mxu1 %vm5652_vm9, %v5040_v24  ;;  %v6255_v45 = vand.u32 4294901760, %v5699_v37 }
 0x1a0   : > { %4622 = vmatprep.subr.bf16.mxu1 %v5676_v55 }
 0x1a2   : > { %4189 = vmatmul.mubr.f32.gmra.mrb[2].mxu1 %v5699_v37 }
 0x1a3   : > { %4191 = vmatprep.mubr.f32.mxu1 %v1204_v19 }
 0x1a6   : > { %4192 = vmatmul.mubr.f32.gmra.mrb[4].mxu1 %v5719_v52 }
 0x1a7   : > { %4194 = vmatprep.mubr.f32.mxu1 %v1224_v50 }
 0x1aa   : > { %4195 = vmatmul.mubr.f32.gmra.mrb[6].mxu1 %v1234_v35 }
 0x1ab   : > { %4201 = vmatprep.mubr.f32.mxu1 %v1165_v34 }
 0x1ae   : > { %4202 = vmatmul.mubr.f32.vlgmr.msra.gmra.mrb[0].mxu1 %v1175_v21 }
 0x1af   : > { %4204 = vmatprep.mubr.f32.mxu1 %v1185_v3  ;;  %4624 = vmatpush3.bf16.msra.mxu1 %v5676_v55 }
 0x1b0   : > { %4626 = vmatprep.subr.msk.bf16.mxu1 %vm5652_vm9, %v5040_v24 }
 0x1b2   : > { %4205 = vmatmul.mubr.f32.gmra.mrb[2].mxu1 %v6255_v45 }
 0x1b3   : > { %4207 = vmatprep.mubr.f32.mxu1 %v1205_v32 }
 0x1b6   : > { %4208 = vmatmul.mubr.f32.gmra.mrb[4].mxu1 %v1215_v9 }
 0x1b7   : > { %4210 = vmatprep.mubr.f32.mxu1 %v1225_v40 }
 0x1ba   : > { %4211 = vmatmul.mubr.f32.gmra.mrb[6].mxu1 %v1235_v2 }
 0x1bb   : > { %4217 = vmatprep.mubr.f32.mxu1 %v5682_v38 }
 0x1be   : > { %4218 = vmatmul.mubr.f32.vlgmr.msra.gmra.mrb[0].mxu1 %v5679_v10 }
 0x1bf   : > { %4220 = vmatprep.mubr.f32.mxu1 %v5695_v28  ;;  %4628 = vmatpush3.bf16.msk.msra.mxu1 %vm5652_vm9, %v5040_v24 }
 0x1c0   : > { %4630 = vmatprep.subr.msk.bf16.mxu1 %vm5223_vm13, %v5040_v24 }
 0x1c2   : > { %4221 = vmatmul.mubr.f32.gmra.mrb[2].mxu1 %v5692_v60 }
 0x1c3   : > { %4223 = vmatprep.mubr.f32.mxu1 %v5716_v39 }
 0x1c6   : > { %4224 = vmatmul.mubr.f32.gmra.mrb[4].mxu1 %v5712_v1 }
 0x1c7   : > { %4226 = vmatprep.mubr.f32.mxu1 %v5731_v41 }
 0x1ca   : > { %4227 = vmatmul.mubr.f32.gmra.mrb[6].mxu1 %v5728_v11 }
 0x1cb   : > { %4233 = vmatprep.mubr.f32.mxu1 %v5682_v38 }
 0x1ce   : > { %4234 = vmatmul.mubr.f32.vlgmr.msra.gmra.mrb[0].mxu1 %v5679_v10 }
 0x1cf   : > { %4236 = vmatprep.mubr.f32.mxu1 %v5695_v28  ;;  %4632 = vmatpush3.bf16.msk.msra.mxu1 %vm5223_vm13, %v5040_v24 }
 0x1d0   : > { %4634 = vmatprep.subr.msk.bf16.mxu1 %vm5264_vm3, %v5040_v24 }
 0x1d2   : > { %4237 = vmatmul.mubr.f32.gmra.mrb[2].mxu1 %v5692_v60 }
 0x1d3   : > { %4239 = vmatprep.mubr.f32.mxu1 %v5716_v39  ;;  %4636 = vmatpush3.bf16.msk.msra.mxu1 %vm5264_vm3, %v5040_v24 }
 0x1d4   : > { %4638 = vmatprep.subr.msk.bf16.mxu1 %vm5317_vm7, %v5040_v24 }
 0x1d6   : > { %4240 = vmatmul.mubr.f32.gmra.mrb[4].mxu1 %v5712_v1 }
 0x1d7   : > { %4242 = vmatprep.mubr.f32.mxu1 %v5731_v41  ;;  %4640 = vmatpush3.bf16.msk.msra.mxu1 %vm5317_vm7, %v5040_v24 }
 0x1d8   : > { %4642 = vmatprep.subr.msk.bf16.mxu1 %vm5372_vm8, %v5040_v24 }
 0x1da   : > { %4243 = vmatmul.mubr.f32.gmra.mrb[6].mxu1 %v5728_v11 }
 0x1db   : > { %4644 = vmatpush3.bf16.msk.msra.mxu1 %vm5372_vm8, %v5040_v24 }
 0x1dc   : > { %4646 = vmatprep.subr.bf16.mxu1 %v5376_v6 }
 0x2a1   : > { %v4235_v10 = vpop.f32.mrb[0].mxu1 }
 0x2a2   : > { %v1847_v38 = vmul.f32 0.25, %v4235_v10  ;;  %v1800_v5 = vpop.f32.mrb[1].mxu1 }
 0x2a3   : > { %v1846_v57 = vmul.f32 0.25, %v1800_v5 }
 0x2a4   : > { %v5814_v21 = vsub.f32 %v5191_v13, %v1847_v38 }
 0x2a5   : > { %v5817_v60 = vsub.f32 %v5188_v12, %v1846_v57  ;;  %v4238_v28 = vpop.f32.mrb[2].mxu1 }
 0x2a6   : > { %v1863_v34 = vmul.f32 %v5814_v21, %v5814_v21  ;;  %v1849_v37 = vmul.f32 0.25, %v4238_v28  ;;  %v1812_v25 = vpop.f32.mrb[3].mxu1 }
 0x2a7   : > { %v1862_v1 = vmul.f32 %v5817_v60, %v5817_v60  ;;  %v1848_v3 = vmul.f32 0.25, %v1812_v25 }
 0x2a8   : > { %v1874_v39 = vsel %vm258_vm0, %v1863_v34, 0  ;;  %v5825_v52 = vsub.f32 %v5216_v16, %v1849_v37 }
 0x2a9   : > { %v5827_v13 = vand.u32 4294901760, %v1874_v39  ;;  %v1871_v12 = vsel %vm258_vm0, %v1862_v1, 0  ;;  %v5831_v7 = vsub.f32 %v5202_v15, %v1848_v3  ;;  %v4241_v19 = vpop.f32.mrb[4].mxu1 }
 0x2aa   : > { %v5833_v9 = vand.u32 4294901760, %v1871_v12  ;;  %v1865_v11 = vmul.f32 %v5825_v52, %v5825_v52  ;;  %v1851_v61 = vmul.f32 0.25, %v4241_v19  ;;  %v1824_v32 = vpop.f32.mrb[5].mxu1 }
 0x2ab   : > { %v5838_v41 = vsub.f32 %v1874_v39, %v5827_v13  ;;  %v1864_v16 = vmul.f32 %v5831_v7, %v5831_v7  ;;  %v1850_v31 = vmul.f32 0.25, %v1824_v32 }
 0x2ac   : > { %v5843_v35 = vsub.f32 %v1871_v12, %v5833_v9  ;;  %v1880_v15 = vsel %vm258_vm0, %v1865_v11, 0  ;;  %v5847_v44 = vsub.f32 %v5366_v63, %v1851_v61 }
 0x2ad   : > { %v1971_v49 = vand.u32 4294901760, %v5838_v41  ;;  %v5850_v50 = vand.u32 4294901760, %v1880_v15  ;;  %v1877_v51 = vsel %vm258_vm0, %v1864_v16, 0  ;;  %v5854_v2 = vsub.f32 %v5219_v17, %v1850_v31  ;;  %v4244_v40 = vpop.f32.mrb[6].mxu1 }
 0x2ae   : > { %v5856_v59 = vand.u32 4294901760, %v1877_v51  ;;  %v1867_v62 = vmul.f32 %v5847_v44, %v5847_v44  ;;  %v1853_v56 = vmul.f32 0.25, %v4244_v40  ;;  %v1836_v8 = vpop.f32.mrb[7].mxu1  ;;  %v1961_v63 = vand.u32 4294901760, %v5843_v35 }
 0x2af   : > { %v1972_v46 = vsub.f32 %v5838_v41, %v1971_v49  ;;  %v5865_v45 = vsub.f32 %v1880_v15, %v5850_v50  ;;  %v1866_v17 = vmul.f32 %v5854_v2, %v5854_v2  ;;  %v1852_v10 = vmul.f32 0.25, %v1836_v8 }
 0x2b0   : > { %v5870_v38 = vsub.f32 %v1877_v51, %v5856_v59  ;;  %v1886_v5 = vsel %vm258_vm0, %v1867_v62, 0  ;;  %v5874_v57 = vsub.f32 %v5410_v29, %v1853_v56  ;;  %v1962_v28 = vsub.f32 %v5843_v35, %v1961_v63 }
 0x2b1   : > { %v5879_v34 = vand.u32 4294901760, %v1886_v5  ;;  %v1883_v37 = vsel %vm258_vm0, %v1866_v17, 0  ;;  %v5883_v25 = vsub.f32 %v5393_v14, %v1852_v10  ;;  %v1973_v11 = vand.u32 4294901760, %v1972_v46 }
 0x2b2   : > { %v5885_v1 = vand.u32 4294901760, %v1883_v37  ;;  %v1869_v3 = vmul.f32 %v5874_v57, %v5874_v57  ;;  %v1963_v39 = vand.u32 4294901760, %v1962_v28  ;;  %v1981_v29 = vand.u32 4294901760, %v5870_v38 }
 0x2b3   : > { %v5891_v12 = vsub.f32 %v1886_v5, %v5879_v34  ;;  %v1868_v19 = vmul.f32 %v5883_v25, %v5883_v25  ;;  %v1991_v61 = vand.u32 4294901760, %v5865_v45 }
 0x2b4   : > { %v5897_v14 = vsub.f32 %v1883_v37, %v5885_v1  ;;  %v1892_v32 = vsel %vm258_vm0, %v1869_v3, 0  ;;  %4261 = vmatprep.mubr.f32.mxu1 %v1963_v39  ;;  %v1982_v16 = vsub.f32 %v5870_v38, %v1981_v29 }
 0x2b5   : > { %v5903_v31 = vand.u32 4294901760, %v1892_v32  ;;  %v1889_v15 = vsel %vm258_vm0, %v1868_v19, 0  ;;  %4262 = vmatmul.mubr.f32.vlgmr.msra.gmra.mrb[8].mxu1 %v1973_v11  ;;  %v1992_v51 = vsub.f32 %v5865_v45, %v1991_v61  ;;  %v2011_v40 = vand.u32 4294901760, %v5891_v12 }
 0x2b6   : > { %v5910_v62 = vand.u32 4294901760, %v1889_v15  ;;  %4648 = vmatpush3.bf16.msra.mxu1 %v5376_v6  ;;  %v1983_v56 = vand.u32 4294901760, %v1982_v16  ;;  %v2001_v8 = vand.u32 4294901760, %v5897_v14 }
 0x2b7   : > { %v5915_v46 = vsub.f32 %v1892_v32, %v5903_v31  ;;  %v1993_v17 = vand.u32 4294901760, %v1992_v51  ;;  %4650 = vmatprep.subr.bf16.mxu1 %v5424_v43  ;;  %v2012_v10 = vsub.f32 %v5891_v12, %v2011_v40 }
 0x2b8   : > { %v5922_v5 = vsub.f32 %v1889_v15, %v5910_v62  ;;  %4264 = vmatprep.mubr.f32.mxu1 %v1983_v56  ;;  %v2002_v6 = vsub.f32 %v5897_v14, %v2001_v8 }
 0x2b9   : > { %4265 = vmatmul.mubr.f32.gmra.mrb[10].mxu1 %v1993_v17  ;;  %v2031_v28 = vand.u32 4294901760, %v5915_v46  ;;  %v2013_v39 = vand.u32 4294901760, %v2012_v10 }
 0x2ba   : > { %4652 = vmatpush3.bf16.msra.mxu1 %v5424_v43  ;;  %v2003_v37 = vand.u32 4294901760, %v2002_v6  ;;  %v2021_v3 = vand.u32 4294901760, %v5922_v5 }
 0x2bb   : > { %4654 = vmatprep.subr.bf16.mxu1 %v5476_v20  ;;  %v2032_v19 = vsub.f32 %v5915_v46, %v2031_v28 }
 0x2bc   : > { %4267 = vmatprep.mubr.f32.mxu1 %v2003_v37  ;;  %v2022_v11 = vsub.f32 %v5922_v5, %v2021_v3 }
 0x2bd   : > { %4268 = vmatmul.mubr.f32.gmra.mrb[12].mxu1 %v2013_v39  ;;  %v2033_v16 = vand.u32 4294901760, %v2032_v19 }
 0x2be   : > { %4656 = vmatpush3.bf16.msra.mxu1 %v5476_v20  ;;  %v2023_v32 = vand.u32 4294901760, %v2022_v11 }
 0x2bf   : > { %4658 = vmatprep.subr.bf16.mxu1 %v5490_v53 }
 0x2c0   : > { %4270 = vmatprep.mubr.f32.mxu1 %v2023_v32 }
 0x2c1   : > { %4271 = vmatmul.mubr.f32.gmra.mrb[14].mxu1 %v2033_v16 }
 0x2c2   : > { %4660 = vmatpush3.bf16.msra.mxu1 %v5490_v53  ;;  %4289 = vmatprep.mubr.f32.mxu1 %v5833_v9 }
 0x2c3   : > { %4662 = vmatprep.subr.bf16.mxu1 %v5494_v23 }
 0x2c5   : > { %4290 = vmatmul.mubr.f32.vlgmr.msra.gmra.mrb[8].mxu1 %v5827_v13 }
 0x2c6   : > { %4292 = vmatprep.mubr.f32.mxu1 %v5856_v59  ;;  %4664 = vmatpush3.bf16.msra.mxu1 %v5494_v23 }
 0x2c7   : > { %4666 = vmatprep.subr.bf16.mxu1 %v5502_v4 }
 0x2c9   : > { %4293 = vmatmul.mubr.f32.gmra.mrb[10].mxu1 %v5850_v50 }
 0x2ca   : > { %4295 = vmatprep.mubr.f32.mxu1 %v5885_v1  ;;  %4668 = vmatpush3.bf16.msra.mxu1 %v5502_v4 }
 0x2cb   : > { %4670 = vmatprep.subr.bf16.mxu1 %v5510_v58 }
 0x2cd   : > { %4296 = vmatmul.mubr.f32.gmra.mrb[12].mxu1 %v5879_v34 }
 0x2ce   : > { %4298 = vmatprep.mubr.f32.mxu1 %v5910_v62  ;;  %4672 = vmatpush3.bf16.msra.mxu1 %v5510_v58 }
 0x2cf   : > { %4674 = vmatprep.subr.bf16.mxu1 %v5518_v30 }
 0x2d1   : > { %4299 = vmatmul.mubr.f32.gmra.mrb[14].mxu1 %v5903_v31 }
 0x2d2   : > { %4676 = vmatpush3.bf16.msra.mxu1 %v5518_v30  ;;  %4317 = vmatprep.mubr.f32.mxu1 %v5843_v35 }
 0x2d3   : > { %4678 = vmatprep.subr.msk.bf16.mxu1 %vm5223_vm13, %v5040_v24 }
 0x2d5   : > { %4318 = vmatmul.mubr.f32.vlgmr.msra.gmra.mrb[8].mxu1 %v5838_v41 }
 0x2d6   : > { %4320 = vmatprep.mubr.f32.mxu1 %v5870_v38  ;;  %4680 = vmatpush3.bf16.msk.msra.mxu1 %vm5223_vm13, %v5040_v24 }
 0x2d7   : > { %4682 = vmatprep.subr.msk.bf16.mxu1 %vm5264_vm3, %v5040_v24 }
 0x2d9   : > { %4321 = vmatmul.mubr.f32.gmra.mrb[10].mxu1 %v5865_v45 }
 0x2da   : > { %4323 = vmatprep.mubr.f32.mxu1 %v5897_v14  ;;  %4684 = vmatpush3.bf16.msk.msra.mxu1 %vm5264_vm3, %v5040_v24 }
 0x2db   : > { %4686 = vmatprep.subr.msk.bf16.mxu1 %vm5317_vm7, %v5040_v24 }
 0x2dd   : > { %4324 = vmatmul.mubr.f32.gmra.mrb[12].mxu1 %v5891_v12 }
 0x2de   : > { %4326 = vmatprep.mubr.f32.mxu1 %v5922_v5  ;;  %4688 = vmatpush3.bf16.msk.msra.mxu1 %vm5317_vm7, %v5040_v24 }
 0x2df   : > { %4690 = vmatprep.subr.msk.bf16.mxu1 %vm5372_vm8, %v5040_v24 }
 0x2e1   : > { %4327 = vmatmul.mubr.f32.gmra.mrb[14].mxu1 %v5915_v46 }
 0x2e2   : > { %4692 = vmatpush3.bf16.msk.msra.mxu1 %vm5372_vm8, %v5040_v24  ;;  %4345 = vmatprep.mubr.f32.mxu1 %v1961_v63 }
 0x2e3   : > { %4694 = vmatprep.subr.bf16.mxu1 %v5558_v22 }
 0x2e5   : > { %4346 = vmatmul.mubr.f32.vlgmr.msra.gmra.mrb[8].mxu1 %v1971_v49 }
 0x2e6   : > { %4348 = vmatprep.mubr.f32.mxu1 %v1981_v29  ;;  %4696 = vmatpush3.bf16.msra.mxu1 %v5558_v22 }
 0x2e7   : > { %4698 = vmatprep.subr.bf16.mxu1 %v5571_v27 }
 0x2e9   : > { %4349 = vmatmul.mubr.f32.gmra.mrb[10].mxu1 %v1991_v61 }
 0x2ea   : > { %4351 = vmatprep.mubr.f32.mxu1 %v2001_v8  ;;  %4700 = vmatpush3.bf16.msra.mxu1 %v5571_v27 }
 0x2eb   : > { %4702 = vmatprep.subr.bf16.mxu1 %v5583_v36 }
 0x2ed   : > { %4352 = vmatmul.mubr.f32.gmra.mrb[12].mxu1 %v2011_v40 }
 0x2ee   : > { %4354 = vmatprep.mubr.f32.mxu1 %v2021_v3  ;;  %4704 = vmatpush3.bf16.msra.mxu1 %v5583_v36 }
 0x2ef   : > { %4706 = vmatprep.subr.bf16.mxu1 %v5595_v42 }
 0x2f1   : > { %4355 = vmatmul.mubr.f32.gmra.mrb[14].mxu1 %v2031_v28 }
 0x2f2   : > { %4708 = vmatpush3.bf16.msra.mxu1 %v5595_v42  ;;  %4373 = vmatprep.mubr.f32.mxu1 %v5833_v9 }
 0x2f3   : > { %4710 = vmatprep.subr.msk.bf16.mxu1 %vm5223_vm13, %v5040_v24 }
 0x2f5   : > { %4374 = vmatmul.mubr.f32.vlgmr.msra.gmra.mrb[8].mxu1 %v5827_v13 }
 0x2f6   : > { %4376 = vmatprep.mubr.f32.mxu1 %v5856_v59  ;;  %4712 = vmatpush3.bf16.msk.msra.mxu1 %vm5223_vm13, %v5040_v24 }
 0x2f7   : > { %4714 = vmatprep.subr.msk.bf16.mxu1 %vm5264_vm3, %v5040_v24 }
 0x2f9   : > { %4377 = vmatmul.mubr.f32.gmra.mrb[10].mxu1 %v5850_v50 }
 0x2fa   : > { %4379 = vmatprep.mubr.f32.mxu1 %v5885_v1  ;;  %4716 = vmatpush3.bf16.msk.msra.mxu1 %vm5264_vm3, %v5040_v24 }
 0x2fb   : > { %4718 = vmatprep.subr.msk.bf16.mxu1 %vm5317_vm7, %v5040_v24 }
 0x2fd   : > { %4380 = vmatmul.mubr.f32.gmra.mrb[12].mxu1 %v5879_v34 }
 0x2fe   : > { %4382 = vmatprep.mubr.f32.mxu1 %v5910_v62  ;;  %4720 = vmatpush3.bf16.msk.msra.mxu1 %vm5317_vm7, %v5040_v24 }
 0x2ff   : > { %4722 = vmatprep.subr.msk.bf16.mxu1 %vm5372_vm8, %v5040_v24 }
 0x301   : > { %4383 = vmatmul.mubr.f32.gmra.mrb[14].mxu1 %v5903_v31 }
 0x302   : > { %4724 = vmatpush3.bf16.msk.msra.mxu1 %vm5372_vm8, %v5040_v24  ;;  %4401 = vmatprep.mubr.f32.mxu1 %v5833_v9 }
 0x303   : > { %4749 = vmatprep.subr.msk.bf16.mxu1 %vm5652_vm9, %v5040_v24 }
 0x305   : > { %4402 = vmatmul.mubr.f32.vlgmr.msra.gmra.mrb[8].mxu1 %v5827_v13 }
 0x306   : > { %4404 = vmatprep.mubr.f32.mxu1 %v5856_v59  ;;  %4750 = vmatpush3.bf16.msk.msra.mxu1 %vm5652_vm9, %v5040_v24 }
 0x309   : > { %4405 = vmatmul.mubr.f32.gmra.mrb[10].mxu1 %v5850_v50 }
 0x30a   : > { %4407 = vmatprep.mubr.f32.mxu1 %v5885_v1 }
 0x30d   : > { %4408 = vmatmul.mubr.f32.gmra.mrb[12].mxu1 %v5879_v34 }
 0x30e   : > { %4410 = vmatprep.mubr.f32.mxu1 %v5910_v62 }
 0x311   : > { %4411 = vmatmul.mubr.f32.gmra.mrb[14].mxu1 %v5903_v31 }
 0x3d8   : > { %v4403_v18 = vpop.f32.mrb[8].mxu1 }
 0x3d9   : > { %v2688_v33 = vsel %vm1073_vm10, %v4403_v18, 0  ;;  %v2638_v48 = vpop.f32.mrb[9].mxu1 }
 0x3da   : > { %v6051_v0 = vand.u32 4294901760, %v2688_v33  ;;  %v2685_v43 = vsel %vm1073_vm10, %v2638_v48, 0 }
 0x3db   : > { %v6054_v20 = vand.u32 4294901760, %v2685_v43 }
 0x3dc   : > { %v6057_v53 = vsub.f32 %v2688_v33, %v6051_v0  ;;  %v4406_v23 = vpop.f32.mrb[10].mxu1 }
 0x3dd   : > { %v6060_v4 = vsub.f32 %v2685_v43, %v6054_v20  ;;  %v2694_v58 = vsel %vm1073_vm10, %v4406_v23, 0  ;;  %v2650_v30 = vpop.f32.mrb[11].mxu1 }
 0x3de   : > { %v2785_v22 = vand.u32 4294901760, %v6057_v53  ;;  %v6064_v27 = vand.u32 4294901760, %v2694_v58  ;;  %v2691_v36 = vsel %vm1073_vm10, %v2650_v30, 0 }
 0x3df   : > { %v2775_v42 = vand.u32 4294901760, %v6060_v4  ;;  %v6068_v13 = vand.u32 4294901760, %v2691_v36 }
 0x3e0   : > { %v2786_v9 = vsub.f32 %v6057_v53, %v2785_v22  ;;  %v6074_v41 = vsub.f32 %v2694_v58, %v6064_v27  ;;  %v4409_v35 = vpop.f32.mrb[12].mxu1 }
 0x3e1   : > { %v6077_v49 = vsub.f32 %v2691_v36, %v6068_v13  ;;  %v2700_v50 = vsel %vm1073_vm10, %v4409_v35, 0  ;;  %v2662_v59 = vpop.f32.mrb[13].mxu1  ;;  %v2776_v63 = vsub.f32 %v6060_v4, %v2775_v42 }
 0x3e2   : > { %v2805_v45 = vand.u32 4294901760, %v6074_v41  ;;  %v6084_v38 = vand.u32 4294901760, %v2700_v50  ;;  %v2697_v34 = vsel %vm1073_vm10, %v2662_v59, 0  ;;  %v2787_v61 = vand.u32 4294901760, %v2786_v9 }
 0x3e3   : > { %v2795_v1 = vand.u32 4294901760, %v6077_v49  ;;  %v6088_v29 = vand.u32 4294901760, %v2697_v34  ;;  %v2777_v12 = vand.u32 4294901760, %v2776_v63 }
 0x3e4   : > { %v6091_v14 = vsub.f32 %v2700_v50, %v6084_v38  ;;  %v4412_v31 = vpop.f32.mrb[14].mxu1  ;;  %v2806_v15 = vsub.f32 %v6074_v41, %v2805_v45 }
 0x3e5   : > { %v2814_v51 = vsub.f32 %v2697_v34, %v6088_v29  ;;  %v2706_v40 = vsel %vm1073_vm10, %v4412_v31, 0  ;;  %v2674_v62 = vpop.f32.mrb[15].mxu1  ;;  %4417 = vmatprep.mubr.f32.mxu0 %v2777_v12  ;;  %v2796_v56 = vsub.f32 %v6077_v49, %v2795_v1  ;;  %v3664_v34 = vld [vmem:[%s6211_s1] ss:$0 sm:$0xff] }
 0x3e6   : > { %v2825_v8 = vand.u32 4294901760, %v6091_v14  ;;  %v6100_v46 = vand.u32 4294901760, %v2706_v40  ;;  %v2703_v17 = vsel %vm1073_vm10, %v2674_v62, 0  ;;  %4418 = vmatmul.mubr.f32.vlgmr.msra.gmra.mrb[8].mxu0 %v2787_v61  ;;  %v2807_v37 = vand.u32 4294901760, %v2806_v15 }
 0x3e7   : > { %v2815_v10 = vand.u32 4294901760, %v2814_v51  ;;  %v6103_v5 = vand.u32 4294901760, %v2703_v17  ;;  %4732 = vmatpush3.bf16.msra.mxu0 %v5670_v47  ;;  %v2797_v6 = vand.u32 4294901760, %v2796_v56 }
 0x3e8   : > { %v2844_v28 = vsub.f32 %v2706_v40, %v6100_v46  ;;  %v2826_v3 = vsub.f32 %v6091_v14, %v2825_v8  ;;  %4734 = vmatprep.subr.bf16.mxu0 %v5674_v54 }
 0x3e9   : > { %v2834_v39 = vsub.f32 %v2703_v17, %v6103_v5  ;;  %4420 = vmatprep.mubr.f32.mxu0 %v2797_v6  ;;  %v2816_v19 = vsub.f32 %v2814_v51, %v2815_v10 }
 0x3ea   : > { %v2845_v11 = vand.u32 4294901760, %v2844_v28  ;;  %4421 = vmatmul.mubr.f32.gmra.mrb[10].mxu0 %v2807_v37  ;;  %v2827_v33 = vand.u32 4294901760, %v2826_v3 }
 0x3eb   : > { %v2835_v32 = vand.u32 4294901760, %v2834_v39  ;;  %v2817_v16 = vand.u32 4294901760, %v2816_v19 }
 0x3ec   : > { %v2846_v18 = vsub.f32 %v2844_v28, %v2845_v11 }
 0x3ed   : > { %4423 = vmatprep.mubr.f32.mxu0 %v2817_v16  ;;  %v2836_v47 = vsub.f32 %v2834_v39, %v2835_v32 }
 0x3ee   : > { %4424 = vmatmul.mubr.f32.gmra.mrb[12].mxu0 %v2827_v33  ;;  %v2847_v43 = vand.u32 4294901760, %v2846_v18 }
 0x3ef   : > { %4433 = vmatprep.mubr.f32.mxu0 %v6054_v20  ;;  %v2837_v48 = vand.u32 4294901760, %v2836_v47 }
 0x3f1   : > { %4426 = vmatprep.mubr.f32.mxu1 %v2837_v48 }
 0x3f2   : > { %4427 = vmatmul.mubr.f32.vlgmr.msra.gmra.mrb[16].mxu1 %v2847_v43  ;;  %4434 = vmatmul.mubr.f32.vlgmr.msra.gmra.mrb[8].mxu0 %v6051_v0 }
 0x3f3   : > { %4436 = vmatprep.mubr.f32.mxu0 %v6068_v13  ;;  %4736 = vmatpush3.bf16.msra.mxu0 %v5674_v54 }
 0x3f4   : > { %4738 = vmatprep.subr.msk.bf16.mxu0 %vm5652_vm9, %v5040_v24 }
 0x3f6   : > { %4437 = vmatmul.mubr.f32.gmra.mrb[10].mxu0 %v6064_v27 }
 0x3f7   : > { %4439 = vmatprep.mubr.f32.mxu0 %v6088_v29 }
 0x3fa   : > { %4440 = vmatmul.mubr.f32.gmra.mrb[12].mxu0 %v6084_v38 }
 0x3fb   : > { %4442 = vmatprep.mubr.f32.mxu0 %v6103_v5 }
 0x3fe   : > { %4443 = vmatmul.mubr.f32.gmra.mrb[14].mxu0 %v6100_v46 }
 0x3ff   : > { %4449 = vmatprep.mubr.f32.mxu0 %v6060_v4 }
 0x402   : > { %4450 = vmatmul.mubr.f32.vlgmr.msra.gmra.mrb[8].mxu0 %v6057_v53 }
 0x403   : > { %4452 = vmatprep.mubr.f32.mxu0 %v6077_v49  ;;  %4740 = vmatpush3.bf16.msk.msra.mxu0 %vm5652_vm9, %v5040_v24 }
 0x404   : > { %4742 = vmatprep.subr.bf16.mxu0 %v5676_v55 }
 0x406   : > { %4453 = vmatmul.mubr.f32.gmra.mrb[10].mxu0 %v6074_v41 }
 0x407   : > { %4455 = vmatprep.mubr.f32.mxu0 %v2814_v51 }
 0x40a   : > { %4456 = vmatmul.mubr.f32.gmra.mrb[12].mxu0 %v6091_v14  ;;  %v3665_v14 = vld [vmem:[%s6212_s2] ss:$0 sm:$0xff] }
 0x40b   : > { %4458 = vmatprep.mubr.f32.mxu0 %v2834_v39 }
 0x40e   : > { %4459 = vmatmul.mubr.f32.gmra.mrb[14].mxu0 %v2844_v28 }
 0x40f   : > { %4465 = vmatprep.mubr.f32.mxu0 %v2775_v42 }
 0x412   : > { %4466 = vmatmul.mubr.f32.vlgmr.msra.gmra.mrb[8].mxu0 %v2785_v22 }
 0x413   : > { %4468 = vmatprep.mubr.f32.mxu0 %v2795_v1  ;;  %4744 = vmatpush3.bf16.msra.mxu0 %v5676_v55 }
 0x414   : > { %4746 = vmatprep.subr.msk.bf16.mxu0 %vm5652_vm9, %v5040_v24 }
 0x416   : > { %4469 = vmatmul.mubr.f32.gmra.mrb[10].mxu0 %v2805_v45 }
 0x417   : > { %4471 = vmatprep.mubr.f32.mxu0 %v2815_v10 }
 0x41a   : > { %4472 = vmatmul.mubr.f32.gmra.mrb[12].mxu0 %v2825_v8 }
 0x41b   : > { %4474 = vmatprep.mubr.f32.mxu0 %v2835_v32 }
 0x41e   : > { %4475 = vmatmul.mubr.f32.gmra.mrb[14].mxu0 %v2845_v11 }
 0x41f   : > { %4481 = vmatprep.mubr.f32.mxu0 %v6054_v20 }
 0x422   : > { %4482 = vmatmul.mubr.f32.vlgmr.msra.gmra.mrb[8].mxu0 %v6051_v0 }
 0x423   : > { %4484 = vmatprep.mubr.f32.mxu0 %v6068_v13  ;;  %4748 = vmatpush3.bf16.msk.msra.mxu0 %vm5652_vm9, %v5040_v24 }
 0x426   : > { %4485 = vmatmul.mubr.f32.gmra.mrb[10].mxu0 %v6064_v27 }
 0x427   : > { %4487 = vmatprep.mubr.f32.mxu0 %v6088_v29 }
 0x42a   : > { %4488 = vmatmul.mubr.f32.gmra.mrb[12].mxu0 %v6084_v38 }
 0x42b   : > { %4490 = vmatprep.mubr.f32.mxu0 %v6103_v5 }
 0x42e   : > { %4491 = vmatmul.mubr.f32.gmra.mrb[14].mxu0 %v6100_v46 }
 0x42f   : > { %4497 = vmatprep.mubr.f32.mxu0 %v6054_v20 }
 0x432   : > { %4498 = vmatmul.mubr.f32.vlgmr.msra.gmra.mrb[8].mxu0 %v6051_v0 }
 0x433   : > { %4500 = vmatprep.mubr.f32.mxu0 %v6068_v13 }
 0x436   : > { %4501 = vmatmul.mubr.f32.gmra.mrb[10].mxu0 %v6064_v27 }
 0x437   : > { %4503 = vmatprep.mubr.f32.mxu0 %v6088_v29 }
 0x43a   : > { %4504 = vmatmul.mubr.f32.gmra.mrb[12].mxu0 %v6084_v38 }
 0x43b   : > { %4506 = vmatprep.mubr.f32.mxu0 %v6103_v5 }
 0x43e   : > { %4507 = vmatmul.mubr.f32.gmra.mrb[14].mxu0 %v6100_v46 }
 0x4c5   : > { %v4428_v24 = vpop.f32.mrb[16].mxu1 }
 0x4c6   : > { %v2839_v26 = vpop.f32.mrb[17].mxu1 }
 0x505   : > { %v4499_v54 = vpop.f32.mrb[8].mxu0 }
 0x506   : > { %v3457_v55 = vmul.f32 0.25, %v4499_v54  ;;  %v3410_v20 = vpop.f32.mrb[9].mxu0 }
 0x507   : > { %v3456_v53 = vmul.f32 0.25, %v3410_v20 }
 0x508   : > { %v3465_v0 = vadd.f32 1e-05, %v3457_v55 }
 0x509   : > { %v3464_v23 = vadd.f32 1e-05, %v3456_v53  ;;  %v4502_v4 = vpop.f32.mrb[10].mxu0 }
 0x50a   : > { %4954 = vrsqrt.f32 %v3465_v0  ;;  %v3459_v58 = vmul.f32 0.25, %v4502_v4  ;;  %v3422_v30 = vpop.f32.mrb[11].mxu0 }
 0x50b   : > { %4956 = vrsqrt.f32 %v3464_v23  ;;  %v3458_v22 = vmul.f32 0.25, %v3422_v30 }
 0x50c   : > { %v3467_v27 = vadd.f32 1e-05, %v3459_v58 }
 0x50d   : > { %v3466_v36 = vadd.f32 1e-05, %v3458_v22  ;;  %v4505_v42 = vpop.f32.mrb[12].mxu0 }
 0x50e   : > { %4958 = vrsqrt.f32 %v3467_v27  ;;  %v3461_v13 = vmul.f32 0.25, %v4505_v42  ;;  %v3434_v9 = vpop.f32.mrb[13].mxu0 }
 0x50f   : > { %4960 = vrsqrt.f32 %v3466_v36  ;;  %v3460_v41 = vmul.f32 0.25, %v3434_v9 }
 0x510   : > { %v3469_v35 = vadd.f32 1e-05, %v3461_v13 }
 0x511   : > { %v3468_v49 = vadd.f32 1e-05, %v3460_v41  ;;  %v4508_v50 = vpop.f32.mrb[14].mxu0 }
 0x512   : > { %4962 = vrsqrt.f32 %v3469_v35  ;;  %v4751_v59 = vadd.f32 %v4508_v50, %v4428_v24  ;;  %v3446_v63 = vpop.f32.mrb[15].mxu0 }
 0x513   : > { %4964 = vrsqrt.f32 %v3468_v49  ;;  %v4752_v45 = vadd.f32 %v3446_v63, %v2839_v26 }
 0x514   : > { %v4955_v38 = vpop.eup %4954  ;;  %v3463_v1 = vmul.f32 0.25, %v4751_v59 }
 0x515   : > { %v4957_v29 = vpop.eup %4956  ;;  %v3481_v12 = vmul.f32 %v4955_v38, %v5814_v21  ;;  %v3462_v61 = vmul.f32 0.25, %v4752_v45 }
 0x516   : > { %v3480_v31 = vmul.f32 %v4957_v29, %v5817_v60  ;;  %v3471_v15 = vadd.f32 1e-05, %v3463_v1 }
 0x517   : > { %v3496_v51 = vmul.f32 %v3664_v34, %v3481_v12  ;;  %v3470_v40 = vadd.f32 1e-05, %v3462_v61 }
 0x518   : > { %v4959_v62 = vpop.eup %4958  ;;  %v3495_v56 = vmul.f32 %v3664_v34, %v3480_v31  ;;  %4966 = vrsqrt.f32 %v3471_v15 }
 0x519   : > { %v4961_v21 = vpop.eup %4960  ;;  %v3511_v8 = vadd.f32 %v3665_v14, %v3496_v51  ;;  %v3483_v46 = vmul.f32 %v4959_v62, %v5825_v52  ;;  %4968 = vrsqrt.f32 %v3470_v40 }
 0x51a   : > { %v3510_v60 = vadd.f32 %v3665_v14, %v3495_v56  ;;  %v3482_v17 = vmul.f32 %v4961_v21, %v5831_v7 }
 0x51b   : > { %3519 = vst.msk [vmem:[%s6173_s6 + $0x8] sm:$0xff] %vm258_vm0, %v3511_v8  ;;  %v3498_v10 = vmul.f32 %v3664_v34, %v3483_v46 }
 0x51c   : > { %v4963_v5 = vpop.eup %4962  ;;  %3518 = vst.msk [vmem:[%s6173_s6] sm:$0xff] %vm258_vm0, %v3510_v60  ;;  %v3497_v6 = vmul.f32 %v3664_v34, %v3482_v17 }
 0x51d   : > { %v4965_v28 = vpop.eup %4964  ;;  %v3513_v37 = vadd.f32 %v3665_v14, %v3498_v10  ;;  %v3485_v3 = vmul.f32 %v4963_v5, %v5847_v44 }
 0x51e   : > { %v3512_v39 = vadd.f32 %v3665_v14, %v3497_v6  ;;  %v3484_v52 = vmul.f32 %v4965_v28, %v5854_v2 }
 0x51f   : > { %3521 = vst.msk [vmem:[%s6173_s6 + $0x18] sm:$0xff] %vm258_vm0, %v3513_v37  ;;  %v3500_v7 = vmul.f32 %v3664_v34, %v3485_v3 }
 0x520   : > { %3520 = vst.msk [vmem:[%s6173_s6 + $0x10] sm:$0xff] %vm258_vm0, %v3512_v39  ;;  %v3499_v19 = vmul.f32 %v3664_v34, %v3484_v52 }
 0x521   : > { %v3515_v11 = vadd.f32 %v3665_v14, %v3500_v7 }
 0x522   : > { %v4967_v32 = vpop.eup %4966  ;;  %v3514_v16 = vadd.f32 %v3665_v14, %v3499_v19 }
 0x523   : > { %v4969_v18 = vpop.eup %4968  ;;  %3523 = vst.msk [vmem:[%s6173_s6 + $0x28] sm:$0xff] %vm258_vm0, %v3515_v11  ;;  %v3487_v33 = vmul.f32 %v4967_v32, %v5874_v57 }
 0x524   : > { %3522 = vst.msk [vmem:[%s6173_s6 + $0x20] sm:$0xff] %vm258_vm0, %v3514_v16  ;;  %v3486_v44 = vmul.f32 %v4969_v18, %v5883_v25 }
 0x525   : > { %v3502_v2 = vmul.f32 %v3664_v34, %v3487_v33 }
 0x526   : > { %v3501_v47 = vmul.f32 %v3664_v34, %v3486_v44 }
 0x527   : > { %v3517_v48 = vadd.f32 %v3665_v14, %v3502_v2 }
 0x528   : > { %v3516_v43 = vadd.f32 %v3665_v14, %v3501_v47 }
 0x529   : > { %3525 = vst.msk [vmem:[%s6173_s6 + $0x38] sm:$0xff] %vm258_vm0, %v3517_v48 }
 0x52a   : > { %3524 = vst.msk [vmem:[%s6173_s6 + $0x30] sm:$0xff] %vm258_vm0, %v3516_v43 }
 0x52b PF: > { %p13_p8 = scmp.ge.s32.totalorder %s5081_s17, 4   ;;  %s6256_s12 = smov %s5026_s13 }
 0x52c   : > { %s6257_s13 = smov %s5030_s14  ;;  %s6258_s14 = smov %s5091_s20 }
 0x52d   : > { %s6259_s15 = smov %s5081_s17  ;;  %15 = sbr.rel (!%p13_p8) target bundleno = 3 (0x3), region = 72 }
 0x534   :  { %3548 = vsyncpa [#allocation3], 1 }
 0x535   :  { %3550 = vsyncpa [#allocation3 + $0x1], 1 }

</bundles_post_ra>
